<compile_context>
chip_gen: v7x
topology: tpu7x:2x2x1
jax: 0.10.0
libtpu: 0.0.40
codegen_flags: <defaults>
</compile_context>

<pallas_src>
import functools

import jax
import jax.numpy as jnp
import numpy as np
from jax.experimental import pallas as pl
from jax.experimental.pallas import tpu as pltpu

NEG_SLOPE = 0.01  # nn.LeakyReLU default


def _leaky_relu(v):
    return jnp.where(v > 0, v, NEG_SLOPE * v)


def _epic_kernel(
    x_ref, mask_ref, ctx_ref,
    w_hyper_ref, b_hyper_ref,      # fused ConcatSquashLinear_2inputs weights
    w_gb_ref, b_gb_ref,            # fused hyper_gate / hyper_bias of layer
    w_main_ref, b_main_ref,        # main layer
    ctx_out_ref, ret_ref,
    *, sum_scale,
):
    Bt, N, dim_in = x_ref.shape
    dim_ctx = ctx_ref.shape[-1]
    dim_out = b_main_ref.shape[-1]
    cd = w_main_ref.dtype          # matmul compute dtype (bf16 by default)

    x = x_ref[...]                 # (Bt, N, dim_in)  f32
    m = mask_ref[...]              # (Bt, N, 1)
    c = ctx_ref[:, 0, :]           # (Bt, dim_ctx)

    # x = x * mask ; masked sum / mean over the point axis.
    # mask is assumed binary, so sum(x*m*m) == sum(x*m) bit-exactly.
    xm = x * m                                          # (Bt, N, dim_in)
    xs = jnp.sum(xm, axis=1)                            # (Bt, dim_in)
    msum = jnp.sum(m, axis=1)                           # (Bt, 1)
    # NOTE: like the PyTorch reference, an all-zero mask row produces NaN/Inf
    # (no clamp) — callers must guarantee at least one valid point per batch.
    x_mean = xs * pl.reciprocal(msum, approx=False)     # EUP slot
    x_sum = xs * sum_scale

    # Fused ConcatSquashLinear_2inputs(x_sum, x_mean, ctx):
    #   one (Bt, 2*dim_in+dim_ctx) x (2*dim_in+dim_ctx, 4*dim_ctx) dot whose
    #   column blocks are [gate1 | gate2 | bias1+bias2 | ctx_lin].
    h = jnp.concatenate([x_sum, x_mean, c], axis=-1).astype(cd)
    hyper = (jnp.dot(h, w_hyper_ref[...], preferred_element_type=jnp.float32)
             + b_hyper_ref[...])                        # (Bt, 4*dim_ctx) f32
    gate1 = jax.nn.sigmoid(hyper[:, 0:dim_ctx])
    gate2 = jax.nn.sigmoid(hyper[:, dim_ctx:2 * dim_ctx])
    bias12 = hyper[:, 2 * dim_ctx:3 * dim_ctx]
    ctx_lin = hyper[:, 3 * dim_ctx:4 * dim_ctx]
    ctx_new = _leaky_relu(ctx_lin * gate1 * gate2 + bias12)   # (Bt, dim_ctx)

    # Fused hyper_gate / hyper_bias of ConcatSquashLinear: one dot, then split.
    gb = (jnp.dot(ctx_new.astype(cd), w_gb_ref[...],
                  preferred_element_type=jnp.float32) + b_gb_ref[...])
    gate = jax.nn.sigmoid(gb[:, :dim_out])              # (Bt, dim_out)
    bias = gb[:, dim_out:]                              # (Bt, dim_out)

    # Main matmul with M = Bt*N (>=256) to fill the MXU rows.
    xm_flat = xm.reshape(Bt * N, dim_in).astype(cd)
    main = (jnp.dot(xm_flat, w_main_ref[...],
                    preferred_element_type=jnp.float32)
            + b_main_ref[...]).reshape(Bt, N, dim_out)
    ret = _leaky_relu(main * gate[:, None, :] + bias[:, None, :])

    ctx_out_ref[:, 0, :] = ctx_new
    ret_ref[...] = ret


def _pack_params(p, compute_dtype):
    """Host-side fusion of the hyper-network weights into block-diagonal mats."""
    dim_in, dim_out = p["w_main"].shape
    dim_ctx = p["w_lc"].shape[0]
    zi = jnp.zeros((dim_in, dim_ctx), jnp.float32)
    zc = jnp.zeros((dim_ctx, dim_ctx), jnp.float32)
    # LHS layout: [x_sum | x_mean | ctx]; RHS columns: [gate1|gate2|bias1+2|ctx_lin]
    w_hyper = jnp.concatenate([
        jnp.concatenate([p["w_hg1"], zi, p["w_hb1"], zi], axis=1),
        jnp.concatenate([zi, p["w_hg2"], p["w_hb2"], zi], axis=1),
        jnp.concatenate([zc, zc, zc, p["w_lc"]], axis=1),
    ], axis=0)                                           # (2*din+dctx, 4*dctx)
    b_hyper = jnp.concatenate(
        [p["b_hg1"], p["b_hg2"], jnp.zeros((1, dim_ctx), jnp.float32),
         p["b_lc"]], axis=1)                             # (1, 4*dctx)
    w_gb = jnp.concatenate([p["w_hg"], p["w_hb"]], axis=1)   # (dctx, 2*dout)
    b_gb = jnp.concatenate(
        [p["b_hg"], jnp.zeros((1, dim_out), jnp.float32)], axis=1)
    return (w_hyper.astype(compute_dtype), b_hyper,
            w_gb.astype(compute_dtype), b_gb,
            p["w_main"].astype(compute_dtype), p["b_main"])


def _pick_block_batch(B, N, target_rows=256):
    """Bt such that Bt*N ~ 256 MXU rows, Bt | B, and (if possible) grid >= 2."""
    bt = max(1, min(B, target_rows // max(N, 1)))
    if B >= 2:
        bt = min(bt, max(1, B // 2))   # keep >= 2 grid steps (v7x has 2 TCs)
    while B % bt:
        bt -= 1
    return bt


def epic_concat_squash_linear(ctx, x, mask, params, sum_scale=1e-4,
                              compute_dtype=jnp.bfloat16, block_batch=None):
    B, N, dim_in = x.shape
    dim_ctx = ctx.shape[-1]
    dim_out = params["w_main"].shape[1]

    Bt = block_batch if block_batch is not None else _pick_block_batch(B, N)
    assert B % Bt == 0, "block_batch must divide batch size"

    weights = _pack_params(params, compute_dtype)

    def batched_spec(shape):
        nd = len(shape)
        return pl.BlockSpec((Bt,) + tuple(shape[1:]),
                            lambda b, _nd=nd: (b,) + (0,) * (_nd - 1))

    def full_spec(a):
        return pl.BlockSpec(a.shape, lambda b, _nd=a.ndim: (0,) * _nd)

    in_specs = ([batched_spec(x.shape),
                 batched_spec(mask.shape),
                 batched_spec(ctx.shape)]
                + [full_spec(w) for w in weights])
    out_specs = [batched_spec((B, 1, dim_ctx)),
                 batched_spec((B, N, dim_out))]
    out_shape = [jax.ShapeDtypeStruct((B, 1, dim_ctx), jnp.float32),
                 jax.ShapeDtypeStruct((B, N, dim_out), jnp.float32)]

    kernel = functools.partial(_epic_kernel, sum_scale=sum_scale)
    return pl.pallas_call(
        kernel,
        grid=(B // Bt,),
        in_specs=in_specs,
        out_specs=out_specs,
        out_shape=out_shape,
        compiler_params=pltpu.CompilerParams(
            dimension_semantics=("parallel",),
            vmem_limit_bytes=32 * 1024 * 1024,
        ),
    )(x, mask, ctx, *weights)


def _wn_linear(key, fan_in, fan_out, bias=True):
    """Deterministic weight-norm linear: effective W = g * v / ||v||_row.

    Returns W transposed to (fan_in, fan_out); bias as (1, fan_out)."""
    kv, kg, kb = jax.random.split(key, 3)
    v = jax.random.normal(kv, (fan_out, fan_in), jnp.float32) * 0.1
    g = jax.random.uniform(kg, (fan_out,), jnp.float32, minval=0.5, maxval=1.5)
    w = v * (g / jnp.linalg.norm(v, axis=1))[:, None]      # (out, in)
    w_t = jnp.asarray(w.T)                                  # (in, out)
    if bias:
        b = jax.random.normal(kb, (fan_out,), jnp.float32) * 0.1
        return w_t, b.reshape(1, fan_out)
    return w_t


def _ref_forward(ctx, x, mask, p, sum_scale=1e-4, compute_dtype=jnp.bfloat16):
    """Pure-JAX reference mirroring the PyTorch forward, with matched
    bf16-in / f32-accumulate matmuls so tolerances stay tight."""
    def dot(a, w):
        return jnp.dot(a.astype(compute_dtype), w.astype(compute_dtype),
                       preferred_element_type=jnp.float32)
    x = x * mask
    x_sum = (x * mask).sum(1, keepdims=True)
    x_mean = x_sum / mask.sum(1, keepdims=True)
    x_sum = x_sum * sum_scale
    gate1 = jax.nn.sigmoid(dot(x_sum, p["w_hg1"]) + p["b_hg1"])
    bias1 = dot(x_sum, p["w_hb1"])
    gate2 = jax.nn.sigmoid(dot(x_mean, p["w_hg2"]) + p["b_hg2"])
    bias2 = dot(x_mean, p["w_hb2"])
    ctx_new = _leaky_relu((dot(ctx, p["w_lc"]) + p["b_lc"]) * gate1 * gate2
                          + bias1 + bias2)
    gate = jax.nn.sigmoid(dot(ctx_new, p["w_hg"]) + p["b_hg"])
    bias = dot(ctx_new, p["w_hb"])
    ret = _leaky_relu((dot(x, p["w_main"]) + p["b_main"]) * gate + bias)
    return ctx_new, ret


if __name__ == "__main__":
    B, N, dim_in, dim_out, dim_ctx = 8, 64, 32, 32, 32
    sum_scale = 1e-4

    key = jax.random.PRNGKey(0)
    ks = jax.random.split(key, 11)
    x = jax.random.normal(ks[0], (B, N, dim_in), jnp.float32)
    ctx = jax.random.normal(ks[1], (B, 1, dim_ctx), jnp.float32)
    mask = (jax.random.uniform(ks[2], (B, N, 1)) > 0.3).astype(jnp.float32)
    mask = mask.at[:, 0, :].set(1.0)  # guarantee nonzero mask sum per batch

    params = {}
    # _layer_ctx = ConcatSquashLinear_2inputs(dim_ctx, dim_ctx, dim_in, dim_in)
    params["w_lc"], params["b_lc"] = _wn_linear(ks[3], dim_ctx, dim_ctx)
    params["w_hg1"], params["b_hg1"] = _wn_linear(ks[4], dim_in, dim_ctx)
    params["w_hb1"] = _wn_linear(ks[5], dim_in, dim_ctx, bias=False)
    params["w_hg2"], params["b_hg2"] = _wn_linear(ks[6], dim_in, dim_ctx)
    params["w_hb2"] = _wn_linear(ks[7], dim_in, dim_ctx, bias=False)
    # layer = ConcatSquashLinear(dim_in, dim_out, dim_ctx)
    params["w_main"], params["b_main"] = _wn_linear(ks[8], dim_in, dim_out)
    params["w_hb"] = _wn_linear(ks[9], dim_ctx, dim_out, bias=False)
    params["w_hg"], params["b_hg"] = _wn_linear(ks[10], dim_ctx, dim_out)

    ctx_out, ret = epic_concat_squash_linear(ctx, x, mask, params,
                                             sum_scale=sum_scale)
    jax.block_until_ready((ctx_out, ret))

    ctx_ref, ret_ref = _ref_forward(ctx, x, mask, params, sum_scale=sum_scale)
    np.testing.assert_allclose(np.asarray(ctx_out), np.asarray(ctx_ref),
                               rtol=1e-2, atol=1e-3)
    np.testing.assert_allclose(np.asarray(ret), np.asarray(ret_ref),
                               rtol=1e-2, atol=1e-3)
    print("KERNEL_OK")
</pallas_src>

<mosaic_0001>
module attributes {stable_mosaic.version = 11 : i64} {
  func.func @_epic_kernel(%arg0: i32, %arg1: memref<4x64x32xf32, #tpu.memory_space<vmem>>, %arg2: memref<4x64x1xf32, #tpu.memory_space<vmem>>, %arg3: memref<4x1x32xf32, #tpu.memory_space<vmem>>, %arg4: memref<96x128xbf16, #tpu.memory_space<vmem>>, %arg5: memref<1x128xf32, #tpu.memory_space<vmem>>, %arg6: memref<32x64xbf16, #tpu.memory_space<vmem>>, %arg7: memref<1x64xf32, #tpu.memory_space<vmem>>, %arg8: memref<32x32xbf16, #tpu.memory_space<vmem>>, %arg9: memref<1x32xf32, #tpu.memory_space<vmem>>, %arg10: memref<4x1x32xf32, #tpu.memory_space<vmem>>, %arg11: memref<4x64x32xf32, #tpu.memory_space<vmem>>) attributes {dimension_semantics = [#tpu.dimension_semantics<parallel>], iteration_bounds = array<i64: 2>, scalar_prefetch = 0 : i64, scratch_operands = 0 : i64, tpu.core_type = #tpu.core_type<tc>, window_params = [{transform_indices = @transform_0, window_bounds = array<i64: 4, 64, 32>}, {transform_indices = @transform_1, window_bounds = array<i64: 4, 64, 1>}, {transform_indices = @transform_2, window_bounds = array<i64: 4, 1, 32>}, {pipeline_mode = #tpu.pipeline_mode<synchronous>, transform_indices = @transform_3, window_bounds = array<i64: 96, 128>}, {pipeline_mode = #tpu.pipeline_mode<synchronous>, transform_indices = @transform_4, window_bounds = array<i64: 1, 128>}, {pipeline_mode = #tpu.pipeline_mode<synchronous>, transform_indices = @transform_5, window_bounds = array<i64: 32, 64>}, {pipeline_mode = #tpu.pipeline_mode<synchronous>, transform_indices = @transform_6, window_bounds = array<i64: 1, 64>}, {pipeline_mode = #tpu.pipeline_mode<synchronous>, transform_indices = @transform_7, window_bounds = array<i64: 32, 32>}, {pipeline_mode = #tpu.pipeline_mode<synchronous>, transform_indices = @transform_8, window_bounds = array<i64: 1, 32>}, {transform_indices = @transform_9, window_bounds = array<i64: 4, 1, 32>}, {transform_indices = @transform_10, window_bounds = array<i64: 4, 64, 32>}]} {
    %c0 = arith.constant 0 : index
    %c0_0 = arith.constant 0 : index
    %c0_1 = arith.constant 0 : index
    %0 = vector.load %arg1[%c0, %c0_0, %c0_1] : memref<4x64x32xf32, #tpu.memory_space<vmem>>, vector<4x64x32xf32>
    %c0_2 = arith.constant 0 : index
    %c0_3 = arith.constant 0 : index
    %c0_4 = arith.constant 0 : index
    %1 = vector.load %arg2[%c0_2, %c0_3, %c0_4] : memref<4x64x1xf32, #tpu.memory_space<vmem>>, vector<4x64x1xf32>
    %c0_5 = arith.constant 0 : index
    %c0_6 = arith.constant 0 : index
    %c0_7 = arith.constant 0 : index
    %2 = vector.load %arg3[%c0_5, %c0_6, %c0_7] : memref<4x1x32xf32, #tpu.memory_space<vmem>>, vector<4x1x32xf32>
    %3 = vector.shape_cast %2 : vector<4x1x32xf32> to vector<4x32xf32>
    %4 = vector.broadcast %1 : vector<4x64x1xf32> to vector<4x64x32xf32>
    %5 = arith.mulf %0, %4 : vector<4x64x32xf32>
    %cst = arith.constant dense<0.000000e+00> : vector<4x32xf32>
    %6 = vector.multi_reduction <add>, %5, %cst [1] : vector<4x64x32xf32> to vector<4x32xf32>
    %cst_8 = arith.constant dense<0.000000e+00> : vector<4x1xf32>
    %7 = vector.multi_reduction <add>, %1, %cst_8 [1] : vector<4x64x1xf32> to vector<4x1xf32>
    %8 = tpu.reciprocal %7 : vector<4x1xf32> -> vector<4x1xf32>
    %9 = vector.broadcast %8 : vector<4x1xf32> to vector<4x32xf32>
    %10 = arith.mulf %6, %9 : vector<4x32xf32>
    %cst_9 = arith.constant 9.99999974E-5 : f32
    %11 = vector.broadcast %cst_9 : f32 to vector<4x32xf32>
    %12 = arith.mulf %6, %11 : vector<4x32xf32>
    %13 = tpu.concatenate %12, %10, %3 in 1 : vector<4x32xf32>, vector<4x32xf32>, vector<4x32xf32> -> vector<4x96xf32>
    %14 = arith.truncf %13 : vector<4x96xf32> to vector<4x96xbf16>
    %c0_10 = arith.constant 0 : index
    %c0_11 = arith.constant 0 : index
    %15 = vector.load %arg4[%c0_10, %c0_11] : memref<96x128xbf16, #tpu.memory_space<vmem>>, vector<96x128xbf16>
    %cst_12 = arith.constant dense<0.000000e+00> : vector<4x128xf32>
    %16 = tpu.matmul %14, %15, %cst_12 {dimension_numbers = #tpu.dot_dimension_numbers<[1], [0], [0], [1], [0, 0, 1, 1], [], []>} : vector<4x96xbf16>, vector<96x128xbf16>, vector<4x128xf32> -> vector<4x128xf32>
    %c0_13 = arith.constant 0 : index
    %c0_14 = arith.constant 0 : index
    %17 = vector.load %arg5[%c0_13, %c0_14] : memref<1x128xf32, #tpu.memory_space<vmem>>, vector<1x128xf32>
    %18 = vector.broadcast %17 : vector<1x128xf32> to vector<4x128xf32>
    %19 = arith.addf %16, %18 : vector<4x128xf32>
    %20 = vector.extract_strided_slice %19 {offsets = [0, 0], sizes = [4, 32], strides = [1, 1]} : vector<4x128xf32> to vector<4x32xf32>
    %21 = arith.negf %20 : vector<4x32xf32>
    %22 = math.exp %21 : vector<4x32xf32>
    %cst_15 = arith.constant 1.000000e+00 : f32
    %23 = vector.broadcast %cst_15 : f32 to vector<4x32xf32>
    %24 = arith.addf %23, %22 : vector<4x32xf32>
    %25 = arith.divf %23, %24 : vector<4x32xf32>
    %26 = vector.extract_strided_slice %19 {offsets = [0, 32], sizes = [4, 32], strides = [1, 1]} : vector<4x128xf32> to vector<4x32xf32>
    %27 = arith.negf %26 : vector<4x32xf32>
    %28 = math.exp %27 : vector<4x32xf32>
    %cst_16 = arith.constant 1.000000e+00 : f32
    %29 = vector.broadcast %cst_16 : f32 to vector<4x32xf32>
    %30 = arith.addf %29, %28 : vector<4x32xf32>
    %31 = arith.divf %29, %30 : vector<4x32xf32>
    %32 = vector.extract_strided_slice %19 {offsets = [0, 64], sizes = [4, 32], strides = [1, 1]} : vector<4x128xf32> to vector<4x32xf32>
    %33 = vector.extract_strided_slice %19 {offsets = [0, 96], sizes = [4, 32], strides = [1, 1]} : vector<4x128xf32> to vector<4x32xf32>
    %34 = arith.mulf %33, %25 : vector<4x32xf32>
    %35 = arith.mulf %34, %31 : vector<4x32xf32>
    %36 = arith.addf %35, %32 : vector<4x32xf32>
    %cst_17 = arith.constant 0.000000e+00 : f32
    %37 = vector.broadcast %cst_17 : f32 to vector<4x32xf32>
    %38 = arith.cmpf ogt, %36, %37 : vector<4x32xf32>
    %cst_18 = arith.constant 0.00999999977 : f32
    %39 = vector.broadcast %cst_18 : f32 to vector<4x32xf32>
    %40 = arith.mulf %39, %36 : vector<4x32xf32>
    %41 = arith.select %38, %36, %40 : vector<4x32xi1>, vector<4x32xf32>
    %42 = arith.truncf %41 : vector<4x32xf32> to vector<4x32xbf16>
    %c0_19 = arith.constant 0 : index
    %c0_20 = arith.constant 0 : index
    %43 = vector.load %arg6[%c0_19, %c0_20] : memref<32x64xbf16, #tpu.memory_space<vmem>>, vector<32x64xbf16>
    %cst_21 = arith.constant dense<0.000000e+00> : vector<4x64xf32>
    %44 = tpu.matmul %42, %43, %cst_21 {dimension_numbers = #tpu.dot_dimension_numbers<[1], [0], [0], [1], [0, 0, 1, 1], [], []>} : vector<4x32xbf16>, vector<32x64xbf16>, vector<4x64xf32> -> vector<4x64xf32>
    %c0_22 = arith.constant 0 : index
    %c0_23 = arith.constant 0 : index
    %45 = vector.load %arg7[%c0_22, %c0_23] : memref<1x64xf32, #tpu.memory_space<vmem>>, vector<1x64xf32>
    %46 = vector.broadcast %45 : vector<1x64xf32> to vector<4x64xf32>
    %47 = arith.addf %44, %46 : vector<4x64xf32>
    %48 = vector.extract_strided_slice %47 {offsets = [0, 0], sizes = [4, 32], strides = [1, 1]} : vector<4x64xf32> to vector<4x32xf32>
    %49 = arith.negf %48 : vector<4x32xf32>
    %50 = math.exp %49 : vector<4x32xf32>
    %cst_24 = arith.constant 1.000000e+00 : f32
    %51 = vector.broadcast %cst_24 : f32 to vector<4x32xf32>
    %52 = arith.addf %51, %50 : vector<4x32xf32>
    %53 = arith.divf %51, %52 : vector<4x32xf32>
    %54 = vector.extract_strided_slice %47 {offsets = [0, 32], sizes = [4, 32], strides = [1, 1]} : vector<4x64xf32> to vector<4x32xf32>
    %55 = vector.shape_cast %5 : vector<4x64x32xf32> to vector<256x32xf32>
    %56 = arith.truncf %55 : vector<256x32xf32> to vector<256x32xbf16>
    %c0_25 = arith.constant 0 : index
    %c0_26 = arith.constant 0 : index
    %57 = vector.load %arg8[%c0_25, %c0_26] : memref<32x32xbf16, #tpu.memory_space<vmem>>, vector<32x32xbf16>
    %cst_27 = arith.constant dense<0.000000e+00> : vector<256x32xf32>
    %58 = tpu.matmul %56, %57, %cst_27 {dimension_numbers = #tpu.dot_dimension_numbers<[1], [0], [0], [1], [0, 0, 1, 1], [], []>} : vector<256x32xbf16>, vector<32x32xbf16>, vector<256x32xf32> -> vector<256x32xf32>
    %c0_28 = arith.constant 0 : index
    %c0_29 = arith.constant 0 : index
    %59 = vector.load %arg9[%c0_28, %c0_29] : memref<1x32xf32, #tpu.memory_space<vmem>>, vector<1x32xf32>
    %60 = vector.broadcast %59 : vector<1x32xf32> to vector<256x32xf32>
    %61 = arith.addf %58, %60 : vector<256x32xf32>
    %62 = vector.shape_cast %61 : vector<256x32xf32> to vector<4x64x32xf32>
    %63 = vector.shape_cast %53 : vector<4x32xf32> to vector<4x1x32xf32>
    %64 = vector.broadcast %63 : vector<4x1x32xf32> to vector<4x64x32xf32>
    %65 = arith.mulf %62, %64 : vector<4x64x32xf32>
    %66 = vector.shape_cast %54 : vector<4x32xf32> to vector<4x1x32xf32>
    %67 = vector.broadcast %66 : vector<4x1x32xf32> to vector<4x64x32xf32>
    %68 = arith.addf %65, %67 : vector<4x64x32xf32>
    %cst_30 = arith.constant 0.000000e+00 : f32
    %69 = vector.broadcast %cst_30 : f32 to vector<4x64x32xf32>
    %70 = arith.cmpf ogt, %68, %69 : vector<4x64x32xf32>
    %cst_31 = arith.constant 0.00999999977 : f32
    %71 = vector.broadcast %cst_31 : f32 to vector<4x64x32xf32>
    %72 = arith.mulf %71, %68 : vector<4x64x32xf32>
    %73 = arith.select %70, %68, %72 : vector<4x64x32xi1>, vector<4x64x32xf32>
    %c0_32 = arith.constant 0 : index
    %c0_33 = arith.constant 0 : index
    %c0_34 = arith.constant 0 : index
    %74 = vector.load %arg10[%c0_32, %c0_33, %c0_34] : memref<4x1x32xf32, #tpu.memory_space<vmem>>, vector<4x1x32xf32>
    %75 = vector.shape_cast %74 : vector<4x1x32xf32> to vector<4x32xf32>
    %76 = vector.shape_cast %41 : vector<4x32xf32> to vector<4x1x32xf32>
    tpu.vector_store %arg10[%c0_32, %c0_33, %c0_34], %76 {strides = array<i32>} : memref<4x1x32xf32, #tpu.memory_space<vmem>>, vector<4x1x32xf32>,
    %c0_35 = arith.constant 0 : index
    %c0_36 = arith.constant 0 : index
    %c0_37 = arith.constant 0 : index
    %77 = vector.load %arg11[%c0_35, %c0_36, %c0_37] : memref<4x64x32xf32, #tpu.memory_space<vmem>>, vector<4x64x32xf32>
    tpu.vector_store %arg11[%c0_35, %c0_36, %c0_37], %73 {strides = array<i32>} : memref<4x64x32xf32, #tpu.memory_space<vmem>>, vector<4x64x32xf32>,
    return
  }
  func.func @transform_0(%arg0: i32) -> (i32, i32, i32) {
    %c0_i32 = arith.constant 0 : i32
    %c0_i32_0 = arith.constant 0 : i32
    %c0_i32_1 = arith.constant 0 : i32
    return %arg0, %c0_i32, %c0_i32_0 : i32, i32, i32
  }
  func.func @transform_1(%arg0: i32) -> (i32, i32, i32) {
    %c0_i32 = arith.constant 0 : i32
    %c0_i32_0 = arith.constant 0 : i32
    %c0_i32_1 = arith.constant 0 : i32
    return %arg0, %c0_i32, %c0_i32_0 : i32, i32, i32
  }
  func.func @transform_2(%arg0: i32) -> (i32, i32, i32) {
    %c0_i32 = arith.constant 0 : i32
    %c0_i32_0 = arith.constant 0 : i32
    %c0_i32_1 = arith.constant 0 : i32
    return %arg0, %c0_i32, %c0_i32_0 : i32, i32, i32
  }
  func.func @transform_3(%arg0: i32) -> (i32, i32) {
    %c0_i32 = arith.constant 0 : i32
    %c0_i32_0 = arith.constant 0 : i32
    %c0_i32_1 = arith.constant 0 : i32
    return %c0_i32, %c0_i32_0 : i32, i32
  }
  func.func @transform_4(%arg0: i32) -> (i32, i32) {
    %c0_i32 = arith.constant 0 : i32
    %c0_i32_0 = arith.constant 0 : i32
    %c0_i32_1 = arith.constant 0 : i32
    return %c0_i32, %c0_i32_0 : i32, i32
  }
  func.func @transform_5(%arg0: i32) -> (i32, i32) {
    %c0_i32 = arith.constant 0 : i32
    %c0_i32_0 = arith.constant 0 : i32
    %c0_i32_1 = arith.constant 0 : i32
    return %c0_i32, %c0_i32_0 : i32, i32
  }
  func.func @transform_6(%arg0: i32) -> (i32, i32) {
    %c0_i32 = arith.constant 0 : i32
    %c0_i32_0 = arith.constant 0 : i32
    %c0_i32_1 = arith.constant 0 : i32
    return %c0_i32, %c0_i32_0 : i32, i32
  }
  func.func @transform_7(%arg0: i32) -> (i32, i32) {
    %c0_i32 = arith.constant 0 : i32
    %c0_i32_0 = arith.constant 0 : i32
    %c0_i32_1 = arith.constant 0 : i32
    return %c0_i32, %c0_i32_0 : i32, i32
  }
  func.func @transform_8(%arg0: i32) -> (i32, i32) {
    %c0_i32 = arith.constant 0 : i32
    %c0_i32_0 = arith.constant 0 : i32
    %c0_i32_1 = arith.constant 0 : i32
    return %c0_i32, %c0_i32_0 : i32, i32
  }
  func.func @transform_9(%arg0: i32) -> (i32, i32, i32) {
    %c0_i32 = arith.constant 0 : i32
    %c0_i32_0 = arith.constant 0 : i32
    %c0_i32_1 = arith.constant 0 : i32
    return %arg0, %c0_i32, %c0_i32_0 : i32, i32, i32
  }
  func.func @transform_10(%arg0: i32) -> (i32, i32, i32) {
    %c0_i32 = arith.constant 0 : i32
    %c0_i32_0 = arith.constant 0 : i32
    %c0_i32_1 = arith.constant 0 : i32
    return %arg0, %c0_i32, %c0_i32_0 : i32, i32, i32
  }
}

</mosaic_0001>

<bundles_post_ra>
// kernel: tpu_custom_call.1
= control target key start
LH: loop header
LB: loop body
LE: loop exit
PB: predicated region body
PF: predicated region fallthrough
CT: control target
= control target key end

     0   :  { %16 = vsyncpa [#allocation3], 0  ;;  %s3153_s0 = inlined_call_operand.vmem [shape: f32[8,64,32], index: 0, kind: input, shape index: {}]   ;;  %s3154_s1 = inlined_call_operand.vmem [shape: f32[8,64,1], index: 1, kind: input, shape index: {}]   ;;  %s3155_s2 = inlined_call_operand.vmem [shape: f32[8,1,32], index: 2, kind: input, shape index: {}]   ;;  %s3156_s3 = inlined_call_operand.vmem [shape: bf16[96,128], index: 3, kind: input, shape index: {}]   ;;  %s3157_s4 = inlined_call_operand.vmem [shape: f32[1,128], index: 4, kind: input, shape index: {}]   ;;  %s3158_s5 = inlined_call_operand.vmem [shape: bf16[32,64], index: 5, kind: input, shape index: {}]   ;;  %s3159_s6 = inlined_call_operand.vmem [shape: f32[1,64], index: 6, kind: input, shape index: {}]   ;;  %s3160_s7 = inlined_call_operand.vmem [shape: bf16[32,32], index: 7, kind: input, shape index: {}]   ;;  %s3161_s8 = inlined_call_operand.vmem [shape: f32[1,32], index: 8, kind: input, shape index: {}]   ;;  %s3162_s9 = inlined_call_operand.hbm [shape: f32[8,1,32], index: 9, kind: output, shape index: {0}]   ;;  %s3163_s10 = inlined_call_operand.vmem [shape: f32[8,64,32], index: 10, kind: output, shape index: {1}]  }
   0x1   :  { %18 = vsyncpa [#allocation3 + $0x1], 0  ;;  %s2224_s13 = smov 0   ;;  %s2226_s14 = smov 0  }
   0x2   :  { %s2228_s15 = smov 0   ;;  %s2230_s16 = smov 0  }
   0x3 LB: > { %s2245_s17 = sadd.s32 4294967295, %s2157_s16   ;;  %s1870_s18 = sadd.s32 4294967294, %s2157_s16   ;;  %s2157_s16 = sphi %s2230_s16, %s3184_s16   ;;  %s2153_s15 = sphi %s2228_s15, %s3183_s15   ;;  %s2149_s14 = sphi %s2226_s14, %s3182_s14   ;;  %s2145_s13 = sphi %s2224_s13, %s3181_s13  }
   0x4   : > { %s2249_s19 = sadd.s32 1, %s2157_s16   ;;  %s235_s20 = sadd.s32 1, %s2153_s15 }
   0x5   : > { %s232_s21 = ssub.s32 %s2157_s16, %s2249_s19  ;;  %p245_p0 = scmp.ne.s32.totalorder %s2153_s15, %s2149_s14 }
   0x6   : > { %p233_p1 = scmp.eq.s32.totalorder %s232_s21, 0  ;;  %p246_p2 = scmp.eq.s32.totalorder %s2245_s17, 1 }
   0x7   : > { %p251_p3 = scmp.ne.s32.totalorder %s2149_s14, %s2145_s13  ;;  %p252_p4 = scmp.eq.s32.totalorder %s1870_s18, 1 }
   0x8   : > { %s2260_s22 = scalar_select %p233_p1, %s2153_s15, %s235_s20  }
   0x9   : > { %p2262_p5 = por %p246_p2, %p245_p0  ;;  %p2266_p6 = por %p252_p4, %p251_p3 }
   0xa   : > { %p1873_p7 = scmp.ge.s32.totalorder %s2157_s16, 1  ;;  %p342_p8 = scmp.lt.s32.totalorder %s2157_s16, 3 }
   0xc   : > { %p343_p9 = pnand %p1873_p7, %p342_p8 }
   0xd   : > { %s1875_s25 = sshll.u32 (!%p343_p9), %s2245_s17, 2  ;;  %v2159_v0 = vmov (!%p343_p9), 0   ;;  %vm770_vm0 = vcmask (!%p343_p9), 7168   ;;  %s2162_s21 = smov (!%p343_p9), 64   ;;  %vm685_vm1 = vcmask (!%p343_p9), 261120   ;;  %vm891_vm2 = vcmask (!%p343_p9), 1041409  }
   0xe   : > { %346 = sbr.rel (%p343_p9) target bundleno = 1223 (0x4c7), region = 56  ;;  %2068 = vset.pattern.permute.xlu1 (!%p343_p9), %v2159_v0  ;;  %2067 = vset.pattern.permute.xlu0 (!%p343_p9), %v2159_v0  ;;  %p398_p10 = scmp.lt.s32.totalorder (!%p343_p9), %s1875_s25, 7  ;;  %vm2163_vm3 = vmmov (!%p343_p9), 0   ;;  %vm893_vm4 = vcmask (!%p343_p9), 1042434   ;;  %vm895_vm5 = vcmask (!%p343_p9), 1043459   ;;  %vm940_vm6 = vcmask (!%p343_p9), 523264  }
   0xf   : > { %vm998_vm7 = vcmask (!%p343_p9), 785408   ;;  %s2165_s30 = smov (!%p343_p9), 96   ;;  %vm1700_vm9 = vcmask (!%p343_p9), 253952  }
  0x15   : > { %s3186_s25 = smov (!%p398_p10, %s1875_s25), 7 }
  0x16   : > { %s2276_s26 = sshll.u32 %s3186_s25, 6  ;;  %s414_s12 = scalar_lea.vmem %s3155_s2, %s3186_s25 }
  0x17   : > { %s2282_s29 = scalar_lea.vmem %s3154_s1, %s2276_s26  ;;  %s2459_s27 = scalar_lea.vmem %s3153_s0, %s2276_s26 }
  0x18   : > { %v465_v1 = vld [vmem:[%s2282_s29 + $0x40] sm:$0xff]  ;;  %v466_v3 = vld [vmem:[%s2282_s29 + $0x48] sm:$0xff]  ;;  %v467_v14 = vld [vmem:[%s2282_s29 + $0x50] sm:$0xff]  ;;  %s2931_s11 = scalar_lea.vmem %s3163_s10, %s2276_s26 }
  0x19   : > { %v457_v2 = vld [vmem:[%s2282_s29] sm:$0xff]  ;;  %535 = vperm.xlu1 %2068, %v465_v1   ;;  %v792_v4 = vsel %vm770_vm0, %v465_v1, 0.0  ;;  %v793_v6 = vsel %vm770_vm0, %v466_v3, 0.0  ;;  %v458_v7 = vld [vmem:[%s2282_s29 + $0x8] sm:$0xff]  ;;  %v459_v15 = vld [vmem:[%s2282_s29 + $0x10] sm:$0xff]  ;;  %v795_v18 = vsel %vm770_vm0, %v467_v14, 0.0 }
  0x1a   : > { %495 = vperm.xlu0 %2067, %v457_v2   ;;  %v771_v5 = vsel %vm770_vm0, %v457_v2, 0.0  ;;  %v474_v8 = vld [vmem:[%s2282_s29 + $0x88] sm:$0xff]  ;;  %v473_v9 = vld [vmem:[%s2282_s29 + $0x80] sm:$0xff]  ;;  %v794_v10 = vadd.f32 %v793_v6, %v792_v4  ;;  %v772_v11 = vsel %vm770_vm0, %v458_v7, 0.0  ;;  %v774_v19 = vsel %vm770_vm0, %v459_v15, 0.0  ;;  %v2303_v22 = vld [vmem:[%s2282_s29 + $0x18] sm:$0xff] }
  0x1b   : > { %v814_v12 = vsel %vm770_vm0, %v474_v8, 0.0  ;;  %v813_v13 = vsel %vm770_vm0, %v473_v9, 0.0  ;;  %v773_v16 = vadd.f32 %v772_v11, %v771_v5  ;;  %v482_v20 = vld [vmem:[%s2282_s29 + $0xc8] sm:$0xff]  ;;  %v481_v21 = vld [vmem:[%s2282_s29 + $0xc0] sm:$0xff]  ;;  %v776_v26 = vsel %vm770_vm0, %v2303_v22, 0.0  ;;  %v475_v27 = vld [vmem:[%s2282_s29 + $0x90] sm:$0xff] }
  0x1c   : > { %v815_v17 = vadd.f32 %v814_v12, %v813_v13  ;;  %v796_v23 = vadd.f32 %v795_v18, %v794_v10  ;;  %v835_v24 = vsel %vm770_vm0, %v482_v20, 0.0  ;;  %v834_v25 = vsel %vm770_vm0, %v481_v21, 0.0  ;;  %v2311_v28 = vld [vmem:[%s2282_s29 + $0xd0] sm:$0xff]  ;;  %v2317_v33 = vld [vmem:[%s2282_s29 + $0x58] sm:$0xff]  ;;  %v2322_v35 = vld [vmem:[%s2282_s29 + $0x60] sm:$0xff] }
  0x1d   : > { %540 = vperm.xlu1 %2068, %v466_v3   ;;  %v775_v29 = vadd.f32 %v774_v19, %v773_v16  ;;  %v836_v30 = vadd.f32 %v835_v24, %v834_v25  ;;  %v816_v31 = vsel %vm770_vm0, %v475_v27, 0.0  ;;  %v837_v32 = vsel %vm770_vm0, %v2311_v28, 0.0  ;;  %v2325_v39 = vld [vmem:[%s2282_s29 + $0x20] sm:$0xff]  ;;  %v2328_v40 = vld [vmem:[%s2282_s29 + $0x98] sm:$0xff]  ;;  %v2342_v47 = vld [vmem:[%s2282_s29 + $0x28] sm:$0xff] }
  0x1e   : > { %500 = vperm.xlu0 %2067, %v458_v7   ;;  %v797_v34 = vsel %vm770_vm0, %v2317_v33, 0.0  ;;  %v817_v37 = vadd.f32 %v816_v31, %v815_v17  ;;  %v2331_v41 = vld [vmem:[%s2282_s29 + $0xd8] sm:$0xff]  ;;  %v778_v43 = vsel %vm770_vm0, %v2325_v39, 0.0  ;;  %v818_v44 = vsel %vm770_vm0, %v2328_v40, 0.0  ;;  %v2345_v48 = vld [vmem:[%s2282_s29 + $0xa0] sm:$0xff]  ;;  %v2351_v50 = vld [vmem:[%s2282_s29 + $0x68] sm:$0xff] }
  0x1f   : > { %v777_v36 = vadd.f32 %v776_v26, %v775_v29  ;;  %v838_v38 = vadd.f32 %v837_v32, %v836_v30  ;;  %v798_v42 = vadd.f32 %v797_v34, %v796_v23  ;;  %v839_v45 = vsel %vm770_vm0, %v2331_v41, 0.0  ;;  %v2348_v49 = vld [vmem:[%s2282_s29 + $0xe0] sm:$0xff]  ;;  %v2360_v58 = vld [vmem:[%s2282_s29 + $0x30] sm:$0xff]  ;;  %v2365_v60 = vld [vmem:[%s2282_s29 + $0xe8] sm:$0xff] }
  0x20   : > { %v799_v46 = vsel %vm770_vm0, %v2322_v35, 0.0  ;;  %v819_v52 = vadd.f32 %v818_v44, %v817_v37  ;;  %v780_v55 = vsel %vm770_vm0, %v2342_v47, 0.0  ;;  %v820_v56 = vsel %vm770_vm0, %v2345_v48, 0.0  ;;  %v2368_v61 = vld [vmem:[%s2282_s29 + $0xa8] sm:$0xff]  ;;  %v2371_v62 = vld [vmem:[%s2282_s29 + $0x70] sm:$0xff]  ;;  %v2382_v7 = vld [vmem:[%s2282_s29 + $0x38] sm:$0xff] }
  0x21   : > { %580 = vperm.xlu1 %2068, %v474_v8   ;;  %v779_v51 = vadd.f32 %v778_v43, %v777_v36  ;;  %v840_v53 = vadd.f32 %v839_v45, %v838_v38  ;;  %v800_v54 = vadd.f32 %v799_v46, %v798_v42  ;;  %v841_v57 = vsel %vm770_vm0, %v2348_v49, 0.0  ;;  %v2385_v8 = vld [vmem:[%s2282_s29 + $0xf0] sm:$0xff]  ;;  %v2389_v10 = vld [vmem:[%s2282_s29 + $0x78] sm:$0xff] }
  0x22   : > { %575 = vperm.xlu0 %2067, %v473_v9   ;;  %v801_v59 = vsel %vm770_vm0, %v2351_v50, 0.0  ;;  %v821_v1 = vadd.f32 %v820_v56, %v819_v52  ;;  %v782_v3 = vsel %vm770_vm0, %v2360_v58, 0.0  ;;  %v843_v4 = vsel %vm770_vm0, %v2365_v60, 0.0  ;;  %v479_v9 = vld [vmem:[%s2282_s29 + $0xb0] sm:$0xff]  ;;  %v488_v19 = vld [vmem:[%s2282_s29 + $0xf8] sm:$0xff] }
  0x23   : > { %v781_v63 = vadd.f32 %v780_v55, %v779_v51  ;;  %v842_v0 = vadd.f32 %v841_v57, %v840_v53  ;;  %v802_v2 = vadd.f32 %v801_v59, %v800_v54  ;;  %v822_v5 = vsel %vm770_vm0, %v2368_v61, 0.0 }
  0x24   : > { %v803_v6 = vsel %vm770_vm0, %v2371_v62, 0.0  ;;  %v823_v13 = vadd.f32 %v822_v5, %v821_v1  ;;  %v845_v16 = vsel %vm770_vm0, %v2385_v8, 0.0  ;;  %v824_v17 = vsel %vm770_vm0, %v479_v9, 0.0  ;;  %v492_v1 = vld [vmem:[%s414_s12 + $0x3] sm:$0x1] }
  0x25   : > { %545 = vperm.xlu1 %2068, %v467_v14   ;;  %v783_v11 = vadd.f32 %v782_v3, %v781_v63  ;;  %v844_v12 = vadd.f32 %v843_v4, %v842_v0  ;;  %v804_v14 = vadd.f32 %v803_v6, %v802_v2  ;;  %v805_v18 = vsel %vm770_vm0, %v2389_v10, 0.0  ;;  %v490_v63 = vld [vmem:[%s414_s12 + $0x1] sm:$0x1]  ;;  %v491_v0 = vld [vmem:[%s414_s12 + $0x2] sm:$0x1] }
  0x26   : > { %505 = vperm.xlu0 %2067, %v459_v15   ;;  %v784_v15 = vsel %vm770_vm0, %v2382_v7, 0.0  ;;  %v825_v24 = vadd.f32 %v824_v17, %v823_v13  ;;  %v847_v26 = vsel %vm770_vm0, %v488_v19, 0.0  ;;  %v2160_v57 = vmov 1966171168   ;;  %v2072_v13 = vld [vmem:[%s3156_s3 + $0x18] sm:$0xff]   ;;  %v433_v17 = vld [vmem:[%s2459_s27 + $0x40] sm:$0xff] }
  0x27   : > { %v846_v23 = vadd.f32 %v845_v16, %v844_v12  ;;  %v806_v25 = vadd.f32 %v805_v18, %v804_v14  ;;  %v917_v59 = vlaneseq  ;;  %v913_v4 = vcombine.low %v491_v0, %v492_v1  ;;  %v2071_v12 = vld [vmem:[%s3156_s3 + $0x10] sm:$0xff]   ;;  %v2073_v14 = vld [vmem:[%s3156_s3 + $0x20] sm:$0xff]  }
  0x28   : > { %v425_v18 = vld [vmem:[%s2459_s27] sm:$0xff] }
  0x29   : > { %620 = vperm.xlu1 %2068, %v482_v20   ;;  %v480_v20 = vld [vmem:[%s2282_s29 + $0xb8] sm:$0xff]  ;;  %v848_v29 = vadd.f32 %v847_v26, %v846_v23  ;;  %v807_v30 = vrot.slane %v806_v25, 4  ;;  %s2166_s29 = smov [#allocation2]  }
  0x2a   : > { %615 = vperm.xlu0 %2067, %v481_v21   ;;  %v785_v21 = vadd.f32 %v784_v15, %v783_v11  ;;  %v2070_v11 = vld [vmem:[%s3156_s3 + $0x8] sm:$0xff]  }
  0x2b   : > { %v849_v34 = vrot.slane %v848_v29, 4  ;;  %v808_v36 = vadd.f32 %v807_v30, %v806_v25 }
  0x2d   : > { %510 = vperm.xlu1 %2068, %v2303_v22   ;;  %v826_v22 = vsel %vm770_vm0, %v480_v20, 0.0  ;;  %v809_v38 = vrot.slane %v808_v36, 2 }
  0x2e   : > { %585 = vperm.xlu0 %2067, %v475_v27   ;;  %v786_v27 = vrot.slane %v785_v21, 4  ;;  %v827_v31 = vadd.f32 %v826_v22, %v825_v24 }
  0x2f   : > { %v810_v44 = vadd.f32 %v809_v38, %v808_v36 }
  0x30   : > { %v787_v32 = vadd.f32 %v786_v27, %v785_v21  ;;  %v828_v37 = vrot.slane %v827_v31, 4  ;;  %v442_v27 = vld [vmem:[%s2459_s27 + $0x88] sm:$0xff] }
  0x31   : > { %625 = vperm.xlu1 %2068, %v2311_v28   ;;  %v811_v46 = vrot.slane %v810_v44, 1 }
  0x32   : > { %550 = vperm.xlu0 %2067, %v2317_v33   ;;  %v788_v28 = vrot.slane %v787_v32, 2  ;;  %v850_v33 = vadd.f32 %v849_v34, %v848_v29  ;;  %v829_v42 = vadd.f32 %v828_v37, %v827_v31  ;;  %v441_v29 = vld [vmem:[%s2459_s27 + $0x80] sm:$0xff] }
  0x33   : > { %v812_v52 = vadd.f32 %v811_v46, %v810_v44  ;;  %v428_v46 = vld [vmem:[%s2459_s27 + $0x18] sm:$0xff] }
  0x34   : > { %v789_v43 = vadd.f32 %v788_v28, %v787_v32 }
  0x35   : > { %515 = vperm.xlu1 %2068, %v2325_v39   ;;  %v851_v39 = vrot.slane %v850_v33, 2 }
  0x36   : > { %590 = vperm.xlu0 %2067, %v2328_v40   ;;  %v830_v40 = vrot.slane %v829_v42, 2  ;;  %v790_v45 = vrot.slane %v789_v43, 1 }
  0x38   : > { %v791_v51 = vadd.f32 %v790_v45, %v789_v43  ;;  %v449_v43 = vld [vmem:[%s2459_s27 + $0xc0] sm:$0xff] }
  0x39   : > { %630 = vperm.xlu1 %2068, %v2331_v41   ;;  %v852_v41 = vadd.f32 %v851_v39, %v850_v33 }
  0x3a   : > { %555 = vperm.xlu0 %2067, %v2322_v35   ;;  %v831_v35 = vadd.f32 %v830_v40, %v829_v42  ;;  %2079 = vrcp.f32 %v791_v51  ;;  %v450_v42 = vld [vmem:[%s2459_s27 + $0xc8] sm:$0xff] }
  0x3b   : > { %2081 = vrcp.f32 %v812_v52 }
  0x3d   : > { %520 = vperm.xlu1 %2068, %v2342_v47   ;;  %v853_v47 = vrot.slane %v852_v41, 1 }
  0x3e   : > { %595 = vperm.xlu0 %2067, %v2345_v48   ;;  %v832_v48 = vrot.slane %v831_v35, 1 }
  0x41   : > { %635 = vperm.xlu1 %2068, %v2348_v49   ;;  %v854_v49 = vadd.f32 %v853_v47, %v852_v41  ;;  %v427_v41 = vld [vmem:[%s2459_s27 + $0x10] sm:$0xff] }
  0x42   : > { %560 = vperm.xlu0 %2067, %v2351_v50   ;;  %v833_v50 = vadd.f32 %v832_v48, %v831_v35 }
  0x43   : > { %2083 = vrcp.f32 %v854_v49  ;;  %v435_v49 = vld [vmem:[%s2459_s27 + $0x50] sm:$0xff] }
  0x44   : > { %2085 = vrcp.f32 %v833_v50  ;;  %v2080_v53 = vpop.eup %2079  ;;  %v436_v50 = vld [vmem:[%s2459_s27 + $0x58] sm:$0xff] }
  0x45   : > { %525 = vperm.xlu1 %2068, %v2360_v58   ;;  %v2082_v54 = vpop.eup %2081  ;;  %v915_v58 = vunpack.c.l.s4 %v2160_v57 }
  0x46   : > { %600 = vperm.xlu0 %2067, %v2368_v61   ;;  %v2424_v61 = vshrl.u32 %v917_v59, 7  ;;  %v444_v59 = vld [vmem:[%s2459_s27 + $0x98] sm:$0xff] }
  0x49   : > { %640 = vperm.xlu1 %2068, %v2365_v60   ;;  %v916_v60 = vunpack.c.0.s8 %v915_v58  ;;  %v443_v58 = vld [vmem:[%s2459_s27 + $0x90] sm:$0xff] }
  0x4a   : > { %565 = vperm.xlu0 %2067, %v2371_v62   ;;  %v489_v62 = vld [vmem:[%s414_s12] sm:$0x1]  ;;  %s2164_s12 = smov 32  }
  0x4b   : > { %v912_v2 = vcombine.low %v489_v62, %v490_v63  ;;  %v2427_v3 = vsub.s32 %v916_v60, %v2424_v61 }
  0x4d   : > { %530 = vperm.xlu1 %2068, %v2382_v7   ;;  %v2084_v55 = vpop.eup %2083  ;;  %v920_v5 = vrot.slane %v912_v2, %v2427_v3  ;;  %v927_v6 = vrot.slane %v913_v4, %v2427_v3  ;;  %v451_v2 = vld [vmem:[%s2459_s27 + $0xd0] sm:$0xff]  ;;  %v452_v4 = vld [vmem:[%s2459_s27 + $0xd8] sm:$0xff] }
  0x4e   : > { %605 = vperm.xlu0 %2067, %v479_v9   ;;  %v2086_v56 = vpop.eup %2085  ;;  %v2069_v9 = vld [vmem:[%s3156_s3] sm:$0xff]  }
  0x4f   : > { %v928_v7 = vcombine.low %v920_v5, %v927_v6 }
  0x51   : > { %645 = vperm.xlu1 %2068, %v2385_v8   ;;  %v935_v8 = vrot.slane %v928_v7, %v2427_v3 }
  0x52   : > { %570 = vperm.xlu0 %2067, %v2389_v10   ;;  %v3164_v10 = vmov 0.0  }
  0x53   : > { %1955 = vmatprep.subr.bf16.mxu0 %v3164_v10  ;;  %1971 = vmatprep.subr.bf16.mxu1 %v3164_v10 }
  0x54   : > { %1956 = vmatpush3.bf16.msra.mxu0 %v2069_v9  ;;  %1967 = vmatprep.mubr.msk.bf16.mxu0 %vm2163_vm3, %v3164_v10 }
  0x55   : > { %650 = vperm.xlu1 %2068, %v488_v19   ;;  %1957 = vmatprep.subr.bf16.mxu0 %v3164_v10  ;;  %v434_v19 = vld [vmem:[%s2459_s27 + $0x48] sm:$0xff] }
  0x56   : > { %610 = vperm.xlu0 %2067, %v480_v20   ;;  %v426_v20 = vld [vmem:[%s2459_s27 + $0x8] sm:$0xff]  ;;  %1975 = vmatprep.mubr.msk.bf16.mxu1 %vm2163_vm3, %v3164_v10 }
  0x58   : > { %1958 = vmatpush3.bf16.msra.mxu0 %v2070_v11  ;;  %v429_v11 = vld [vmem:[%s2459_s27 + $0x20] sm:$0xff] }
  0x59   : > { %866 = vperm.xlu1 %2068, %v2082_v54   ;;  %1959 = vmatprep.subr.bf16.mxu0 %v3164_v10 }
  0x5a   : > { %861 = vperm.xlu0 %2067, %v2080_v53  }
  0x5c   : > { %1960 = vmatpush3.bf16.msra.mxu0 %v2071_v12  ;;  %v430_v12 = vld [vmem:[%s2459_s27 + $0x28] sm:$0xff] }
  0x5d   : > { %876 = vperm.xlu1 %2068, %v2084_v55   ;;  %1961 = vmatprep.subr.bf16.mxu0 %v3164_v10 }
  0x5e   : > { %871 = vperm.xlu0 %2067, %v2086_v56  }
  0x60   : > { %1962 = vmatpush3.bf16.msra.mxu0 %v2072_v13 }
  0x61   : > { %936 = vrot.lane.b32.xlu1 %v935_v8, %s2162_s21  ;;  %1963 = vmatprep.subr.bf16.mxu0 %v3164_v10 }
  0x64   : > { %1964 = vmatpush3.bf16.msra.mxu0 %v2073_v14 }
  0x65   : > { %1965 = vmatprep.subr.bf16.mxu0 %v3164_v10 }
  0x98   : > { %v536_v15 = vpop.permute.xlu1 %535 }
  0x99   : > { %v496_v16 = vpop.permute.xlu0 %495  ;;  %v2465_v24 = vmul.f32 %v536_v15, %v433_v17 }
  0x9a   : > { %v2467_v25 = vmul.f32 %v496_v16, %v425_v18  ;;  %v437_v18 = vld [vmem:[%s2459_s27 + $0x60] sm:$0xff] }
  0x9c   : > { %v541_v21 = vpop.permute.xlu1 %540 }
  0x9d   : > { %v501_v23 = vpop.permute.xlu0 %500  ;;  %v2469_v26 = vmul.f32 %v541_v21, %v434_v19  ;;  %v438_v19 = vld [vmem:[%s2459_s27 + $0x68] sm:$0xff] }
  0x9e   : > { %v2471_v22 = vmul.f32 %v501_v23, %v426_v20 }
  0xa0   : > { %v1141_v31 = vpack.c.bf16 %v2471_v22, %v2467_v25  ;;  %v581_v32 = vpop.permute.xlu1 %580 }
  0xa1   : > { %v576_v34 = vpop.permute.xlu0 %575  ;;  %v2479_v36 = vmul.f32 %v581_v32, %v442_v27  ;;  %v687_v27 = vsel %vm685_vm1, %v2471_v22, 0.0 }
  0xa2   : > { %v2481_v37 = vmul.f32 %v576_v34, %v441_v29  ;;  %v445_v34 = vld [vmem:[%s2459_s27 + $0xa0] sm:$0xff] }
  0xa4   : > { %v546_v33 = vpop.permute.xlu1 %545 }
  0xa5   : > { %v506_v38 = vpop.permute.xlu0 %505  ;;  %v2503_v56 = vmul.f32 %v546_v33, %v435_v49  ;;  %v446_v33 = vld [vmem:[%s2459_s27 + $0xa8] sm:$0xff]  ;;  %v729_v49 = vsel %vm685_vm1, %v2479_v36, 0.0 }
  0xa6   : > { %v2495_v52 = vmul.f32 %v506_v38, %v427_v41  ;;  %v686_v38 = vsel %vm685_vm1, %v2467_v25, 0.0  ;;  %v3168_v25 = vpack.c.bf16 %v2469_v26, %v2465_v24 }
  0xa7   : > { %v688_v41 = vadd.f32 %v687_v27, %v686_v38 }
  0xa8   : > { %v621_v39 = vpop.permute.xlu1 %620 }
  0xa9   : > { %v616_v44 = vpop.permute.xlu0 %615  ;;  %v2487_v40 = vmul.f32 %v621_v39, %v450_v42  ;;  %v689_v42 = vsel %vm685_vm1, %v2495_v52, 0.0  ;;  %v707_v39 = vsel %vm685_vm1, %v2465_v24, 0.0 }
  0xaa   : > { %v2489_v45 = vmul.f32 %v616_v44, %v449_v43  ;;  %v708_v44 = vsel %vm685_vm1, %v2469_v26, 0.0 }
  0xac   : > { %v511_v51 = vpop.permute.xlu1 %510 }
  0xad   : > { %v586_v47 = vpop.permute.xlu0 %585  ;;  %v2497_v48 = vmul.f32 %v511_v51, %v428_v46  ;;  %v431_v51 = vld [vmem:[%s2459_s27 + $0x30] sm:$0xff] }
  0xae   : > { %v2511_v0 = vmul.f32 %v586_v47, %v443_v58  ;;  %v728_v58 = vsel %vm685_vm1, %v2481_v37, 0.0 }
  0xaf   : > { %v1142_v53 = vpack.c.bf16 %v2497_v48, %v2495_v52 }
  0xb0   : > { %v626_v54 = vpop.permute.xlu1 %625 }
  0xb1   : > { %v551_v55 = vpop.permute.xlu0 %550  ;;  %v2519_v8 = vmul.f32 %v626_v54, %v451_v2  ;;  %v453_v2 = vld [vmem:[%s2459_s27 + $0xe0] sm:$0xff] }
  0xb2   : > { %v2505_v57 = vmul.f32 %v551_v55, %v436_v50  ;;  %v691_v50 = vsel %vm685_vm1, %v2497_v48, 0.0 }
  0xb4   : > { %v516_v62 = vpop.permute.xlu1 %515  ;;  %v3169_v22 = vpack.c.bf16 %v2505_v57, %v2503_v56 }
  0xb5   : > { %v591_v63 = vpop.permute.xlu0 %590  ;;  %v2527_v16 = vmul.f32 %v516_v62, %v429_v11  ;;  %v690_v62 = vadd.f32 %v689_v42, %v688_v41 }
  0xb6   : > { %v2513_v1 = vmul.f32 %v591_v63, %v444_v59  ;;  %v710_v59 = vsel %vm685_vm1, %v2503_v56, 0.0  ;;  %v750_v63 = vsel %vm685_vm1, %v2487_v40, 0.0 }
  0xb8   : > { %v631_v6 = vpop.permute.xlu1 %630 }
  0xb9   : > { %v556_v7 = vpop.permute.xlu0 %555  ;;  %v2521_v9 = vmul.f32 %v631_v6, %v452_v4  ;;  %v454_v4 = vld [vmem:[%s2459_s27 + $0xe8] sm:$0xff]  ;;  %v749_v6 = vsel %vm685_vm1, %v2489_v45, 0.0 }
  0xba   : > { %v2537_v29 = vmul.f32 %v556_v7, %v437_v18  ;;  %v693_v7 = vsel %vm685_vm1, %v2527_v16, 0.0  ;;  %v731_v18 = vsel %vm685_vm1, %v2511_v0, 0.0 }
  0xbc   : > { %v521_v14 = vpop.permute.xlu1 %520 }
  0xbd   : > { %v596_v15 = vpop.permute.xlu0 %595  ;;  %v2529_v17 = vmul.f32 %v521_v14, %v430_v12  ;;  %v709_v14 = vadd.f32 %v708_v44, %v707_v39  ;;  %v730_v39 = vadd.f32 %v729_v49, %v728_v58 }
  0xbe   : > { %v2558_v54 = vmul.f32 %v596_v15, %v445_v34  ;;  %v692_v15 = vadd.f32 %v691_v50, %v690_v62  ;;  %v439_v34 = vld [vmem:[%s2459_s27 + $0x70] sm:$0xff]  ;;  %v714_v50 = vsel %vm685_vm1, %v2537_v29, 0.0 }
  0xbf   : > { %v1143_v20 = vpack.c.bf16 %v2529_v17, %v2527_v16  ;;  %v695_v38 = vsel %vm685_vm1, %v2529_v17, 0.0  ;;  %v711_v44 = vadd.f32 %v710_v59, %v709_v14 }
  0xc0   : > { %v636_v21 = vpop.permute.xlu1 %635 }
  0xc1   : > { %v561_v23 = vpop.permute.xlu0 %560  ;;  %v2587_v42 = vmul.f32 %v636_v21, %v453_v2  ;;  %v732_v21 = vadd.f32 %v731_v18, %v730_v39  ;;  %v735_v18 = vsel %vm685_vm1, %v2558_v54, 0.0 }
  0xc2   : > { %v2539_v32 = vmul.f32 %v561_v23, %v438_v19  ;;  %v752_v19 = vsel %vm685_vm1, %v2519_v8, 0.0 }
  0xc4   : > { %v526_v46 = vpop.permute.xlu1 %525  ;;  %v716_v14 = vsel %vm685_vm1, %v2539_v32, 0.0 }
  0xc5   : > { %v601_v47 = vpop.permute.xlu0 %600  ;;  %v2574_v11 = vmul.f32 %v526_v46, %v431_v51  ;;  %v751_v46 = vadd.f32 %v750_v63, %v749_v6  ;;  %v694_v51 = vadd.f32 %v693_v7, %v692_v15  ;;  %v733_v6 = vsel %vm685_vm1, %v2513_v1, 0.0 }
  0xc6   : > { %v2560_v55 = vmul.f32 %v601_v47, %v446_v33  ;;  %v712_v33 = vsel %vm685_vm1, %v2505_v57, 0.0  ;;  %v432_v47 = vld [vmem:[%s2459_s27 + $0x38] sm:$0xff]  ;;  %v754_v7 = vsel %vm685_vm1, %v2521_v9, 0.0 }
  0xc7   : > { %v697_v62 = vsel %vm685_vm1, %v2574_v11, 0.0  ;;  %v753_v2 = vadd.f32 %v752_v19, %v751_v46  ;;  %v713_v49 = vadd.f32 %v712_v33, %v711_v44  ;;  %v696_v58 = vadd.f32 %v695_v38, %v694_v51  ;;  %v440_v33 = vld [vmem:[%s2459_s27 + $0x78] sm:$0xff] }
  0xc8   : > { %v641_v23 = vpop.permute.xlu1 %640  ;;  %v756_v19 = vsel %vm685_vm1, %v2587_v42, 0.0  ;;  %v734_v51 = vadd.f32 %v733_v6, %v732_v21  ;;  %v456_v21 = vld [vmem:[%s2459_s27 + $0xf8] sm:$0xff] }
  0xc9   : > { %v566_v27 = vpop.permute.xlu0 %565  ;;  %v2589_v41 = vmul.f32 %v641_v23, %v454_v4  ;;  %v447_v4 = vld [vmem:[%s2459_s27 + $0xb0] sm:$0xff]  ;;  %v715_v23 = vadd.f32 %v714_v50, %v713_v49 }
  0xca   : > { %v2598_v35 = vmul.f32 %v566_v27, %v439_v34  ;;  %v698_v27 = vadd.f32 %v697_v62, %v696_v58  ;;  %v455_v34 = vld [vmem:[%s2459_s27 + $0xf0] sm:$0xff]  ;;  %v736_v28 = vadd.f32 %v735_v18, %v734_v51 }
  0xcb   : > { %v717_v50 = vadd.f32 %v716_v14, %v715_v23  ;;  %v758_v13 = vsel %vm685_vm1, %v2589_v41, 0.0 }
  0xcc   : > { %v531_v59 = vpop.permute.xlu1 %530  ;;  %v718_v38 = vsel %vm685_vm1, %v2598_v35, 0.0 }
  0xcd   : > { %v606_v63 = vpop.permute.xlu0 %605  ;;  %v2607_v15 = vmul.f32 %v531_v59, %v432_v47  ;;  %v755_v47 = vadd.f32 %v754_v7, %v753_v2  ;;  %v737_v59 = vsel %vm685_vm1, %v2560_v55, 0.0  ;;  %v448_v2 = vld [vmem:[%s2459_s27 + $0xb8] sm:$0xff] }
  0xce   : > { %v2621_v46 = vmul.f32 %v606_v63, %v447_v4  ;;  %v719_v4 = vadd.f32 %v718_v38, %v717_v50 }
  0xcf   : > { %v699_v39 = vsel %vm685_vm1, %v2607_v15, 0.0  ;;  %v757_v63 = vadd.f32 %v756_v19, %v755_v47 }
  0xd0   : > { %v700_v49 = vadd.f32 %v699_v39, %v698_v27  ;;  %v646_v62 = vpop.permute.xlu1 %645  ;;  %v739_v6 = vsel %vm685_vm1, %v2621_v46, 0.0  ;;  %v738_v27 = vadd.f32 %v737_v59, %v736_v28 }
  0xd1   : > { %v571_v58 = vpop.permute.xlu0 %570  ;;  %v2627_v12 = vmul.f32 %v646_v62, %v455_v34  ;;  %v759_v34 = vadd.f32 %v758_v13, %v757_v63 }
  0xd2   : > { %v2629_v5 = vmul.f32 %v571_v58, %v440_v33  ;;  %v701_v43 = vrot.slane %v700_v49, 4  ;;  %v740_v47 = vadd.f32 %v739_v6, %v738_v27 }
  0xd3   : > { %v760_v7 = vsel %vm685_vm1, %v2627_v12, 0.0 }
  0xd4   : > { %v720_v14 = vsel %vm685_vm1, %v2629_v5, 0.0  ;;  %v702_v18 = vadd.f32 %v701_v43, %v700_v49  ;;  %v651_v33 = vpop.permute.xlu1 %650  ;;  %v761_v50 = vadd.f32 %v760_v7, %v759_v34  ;;  %v2074_v34 = vld [vmem:[%s3156_s3 + $0x28] sm:$0xff]  }
  0xd5   : > { %v721_v19 = vadd.f32 %v720_v14, %v719_v4  ;;  %v611_v38 = vpop.permute.xlu0 %610  ;;  %v2641_v39 = vmul.f32 %v651_v33, %v456_v21  ;;  %1966 = vmatpush3.bf16.msra.mxu0 %v2074_v34 }
  0xd6   : > { %v2643_v51 = vmul.f32 %v611_v38, %v448_v2  ;;  %v703_v58 = vrot.slane %v702_v18, 2 }
  0xd7   : > { %v722_v62 = vrot.slane %v721_v19, 4  ;;  %v762_v60 = vsel %vm685_vm1, %v2641_v39, 0.0 }
  0xd8   : > { %v741_v28 = vsel %vm685_vm1, %v2643_v51, 0.0  ;;  %v763_v49 = vadd.f32 %v762_v60, %v761_v50  ;;  %v704_v63 = vadd.f32 %v703_v58, %v702_v18  ;;  %v867_v30 = vpop.permute.xlu1 %866 }
  0xd9   : > { %v723_v43 = vadd.f32 %v722_v62, %v721_v19  ;;  %v742_v59 = vadd.f32 %v741_v28, %v740_v47  ;;  %v862_v19 = vpop.permute.xlu0 %861  ;;  %v2659_v47 = vld [vmem:[%s3160_s7] sm:$0xff]  }
  0xda   : > { %v764_v4 = vrot.slane %v763_v49, 4  ;;  %v705_v6 = vrot.slane %v704_v63, 1  ;;  %1979 = vmatprep.subr.bf16.mxu0 %v2659_v47 }
  0xdb   : > { %v743_v21 = vrot.slane %v742_v59, 4  ;;  %v724_v2 = vrot.slane %v723_v43, 2 }
  0xdc   : > { %v765_v7 = vadd.f32 %v764_v4, %v763_v49  ;;  %v706_v38 = vadd.f32 %v705_v6, %v704_v63  ;;  %v877_v63 = vpop.permute.xlu1 %876 }
  0xdd   : > { %v744_v14 = vadd.f32 %v743_v21, %v742_v59  ;;  %v725_v27 = vadd.f32 %v724_v2, %v723_v43  ;;  %v872_v6 = vpop.permute.xlu0 %871 }
  0xde   : > { %v766_v23 = vrot.slane %v765_v7, 2  ;;  %v883_v58 = vmul.f32 0.0001, %v706_v38  ;;  %v879_v21 = vmul.f32 %v862_v19, %v706_v38 }
  0xdf   : > { %v726_v33 = vrot.slane %v725_v27, 1  ;;  %v745_v13 = vrot.slane %v744_v14, 2 }
  0xe0   : > { %v767_v18 = vadd.f32 %v766_v23, %v765_v7 }
  0xe1   : > { %v727_v60 = vadd.f32 %v726_v33, %v725_v27  ;;  %v746_v50 = vadd.f32 %v745_v13, %v744_v14 }
  0xe2   : > { %v768_v28 = vrot.slane %v767_v18, 1 }
  0xe3   : > { %v884_v62 = vmul.f32 0.0001, %v727_v60  ;;  %v747_v43 = vrot.slane %v746_v50, 1  ;;  %v880_v49 = vmul.f32 %v867_v30, %v727_v60  ;;  %v937_v30 = vpop.permute.xlu1 %936 }
  0xe4   : > { %v769_v23 = vadd.f32 %v768_v28, %v767_v18 }
  0xe5   : > { %v892_v59 = vsel %vm891_vm2, %v884_v62, %v883_v58  ;;  %v748_v4 = vadd.f32 %v747_v43, %v746_v50  ;;  %v902_v27 = vsel %vm891_vm2, %v880_v49, %v879_v21  ;;  %v2076_v50 = vld [vmem:[%s3160_s7 + $0x8] sm:$0xff]  }
  0xe6   : > { %v882_v2 = vmul.f32 %v877_v63, %v769_v23  ;;  %v886_v13 = vmul.f32 0.0001, %v769_v23  ;;  %v2077_v63 = vld [vmem:[%s3158_s5] sm:$0xff]   ;;  %v2078_v21 = vld [vmem:[%s3158_s5 + $0x8] sm:$0xff]  }
  0xe7   : > { %v881_v7 = vmul.f32 %v872_v6, %v748_v4  ;;  %v885_v14 = vmul.f32 0.0001, %v748_v4  ;;  %1972 = vmatpush3.bf16.msra.mxu1 %v2077_v63 }
  0xe9   : > { %v903_v34 = vsel %vm893_vm4, %v881_v7, %v902_v27  ;;  %v894_v33 = vsel %vm893_vm4, %v885_v14, %v892_v59 }
  0xea   : > { %v904_v10 = vsel %vm895_vm5, %v882_v2, %v903_v34  ;;  %v896_v44 = vsel %vm895_vm5, %v886_v13, %v894_v33  ;;  %v3170_v2 = vmov 0.0  }
  0xeb   : > { %905 = vrot.lane.b32.xlu0 %v904_v10, %s2164_s12  ;;  %v3167_v10 = vpack.c.bf16 %v2607_v15, %v2574_v11  ;;  %1973 = vmatprep.subr.bf16.mxu1 %v3170_v2 }
  0xec   : > { %1974 = vmatpush3.bf16.msra.mxu1 %v2078_v21 }
  0xed   : > { %2015 = vmatprep.subr.bf16.mxu1 %v2659_v47 }
 0x15d   : > { %v906_v60 = vpop.permute.xlu0 %905 }
 0x15e   : > { %v939_v38 = vsel %vm685_vm1, %v896_v44, %v906_v60 }
 0x15f   : > { %v941_v19 = vsel %vm940_vm6, %v939_v38, %v937_v30 }
 0x160   : > { %v942_v18 = vpack.c.bf16 %v941_v19, %v941_v19  ;;  %v3171_v19 = vpack.c.bf16 %v2539_v32, %v2537_v29  ;;  %v3175_v29 = vpack.c.bf16 %v2560_v55, %v2558_v54 }
 0x162   : > { %1968 = vmatmul.mubr.msk.bf16.vlgmr.msra.gmra.mrb[0].mxu0 %vm998_vm7, %v942_v18  ;;  %v3172_v18 = vpack.c.bf16 %v2629_v5, %v2598_v35  ;;  %v3176_v35 = vpack.c.bf16 %v2643_v51, %v2621_v46 }
 0x163   : > { %1980 = vmatpush3.bf16.msra.mxu0 %v2659_v47  ;;  %1983 = vmatprep.mubr.msk.bf16.mxu0 %vm685_vm1, %v1141_v31  ;;  %v1885_v31 = vld [vmem:[%s3157_s4] ss:$0 sm:$0xff] }
 0x164   : > { %1981 = vmatprep.subr.bf16.mxu0 %v2076_v50 }
 0x167   : > { %1982 = vmatpush3.bf16.msra.mxu0 %v2076_v50 }
 0x16a   : > { %1984 = vmatmul.mubr.msk.bf16.vlgmr.msra.gmra.mrb[4].mxu0 %vm685_vm1, %v1142_v53 }
 0x16b   : > { %1987 = vmatprep.mubr.msk.bf16.mxu0 %vm685_vm1, %v1143_v20 }
 0x172   : > { %1988 = vmatmul.mubr.msk.bf16.gmra.mrb[8].mxu0 %vm685_vm1, %v3167_v10  ;;  %v3173_v10 = vpack.c.bf16 %v2479_v36, %v2481_v37  ;;  %v3177_v36 = vpack.c.bf16 %v2487_v40, %v2489_v45  ;;  %v3178_v37 = vpack.c.bf16 %v2521_v9, %v2519_v8  ;;  %v1894_v40 = vld [vmem:[%s3159_s6] ss:$0 sm:$0xff] }
 0x173   : > { %1991 = vmatprep.mubr.msk.bf16.mxu0 %vm685_vm1, %v3168_v25 }
 0x17a   : > { %1992 = vmatmul.mubr.msk.bf16.gmra.mrb[12].mxu0 %vm685_vm1, %v3169_v22 }
 0x235   : > { %v1036_v52 = vpop.f32.mrb[0].mxu0 }
 0x236   : > { %v1037_v48 = vadd.f32 %v1885_v31, %v1036_v52  ;;  %v1969_v53 = vpop.f32.mrb[1].mxu0 }
 0x237   : > { %v1039_v16 = vpop.f32.mrb[2].mxu0 }
 0x238   : > { %v1893_v17 = vmul.f32 -1.442695, %v1037_v48  ;;  %v1970_v20 = vpop.f32.mrb[3].mxu0 }
 0x23a   : > { %2087 = vpow2.f32 %v1893_v17 }
 0x23d   : > { %v2699_v11 = vpop.f32.mrb[4].mxu0 }
 0x23e   : > { %v2701_v24 = vpop.f32.mrb[5].mxu0 }
 0x23f   : > { %v2703_v26 = vpop.f32.mrb[6].mxu0 }
 0x240   : > { %v2705_v56 = vpop.f32.mrb[7].mxu0 }
 0x244   : > { %v2088_v57 = vpop.eup %2087 }
 0x245   : > { %v1045_v15 = vadd.f32 1.0, %v2088_v57  ;;  %v2707_v44 = vpop.f32.mrb[8].mxu0 }
 0x246   : > { %v2709_v62 = vpop.f32.mrb[9].mxu0 }
 0x247   : > { %2089 = vrcp.f32 %v1045_v15  ;;  %v2711_v58 = vpop.f32.mrb[10].mxu0 }
 0x248   : > { %v2713_v28 = vpop.f32.mrb[11].mxu0 }
 0x24d   : > { %v2715_v43 = vpop.f32.mrb[12].mxu0 }
 0x24e   : > { %v2717_v49 = vpop.f32.mrb[13].mxu0 }
 0x24f   : > { %v2719_v23 = vpop.f32.mrb[14].mxu0 }
 0x250   : > { %v2721_v59 = vpop.f32.mrb[15].mxu0 }
 0x251   : > { %v2090_v4 = vpop.eup %2089 }
 0x252   : > { %1053 = vrot.lane.b32.xlu1 %v2090_v4, %s2162_s21  ;;  %1049 = vrot.lane.b32.xlu0 %v2090_v4, %s2165_s30  ;;  %s1926_s21 = sshll.u32 %s2245_s17, 6 }
 0x253   : > { %s2988_s25 = scalar_lea.hbm %s3162_s9, %s1926_s21 }
 0x256   : > { %1058 = vrot.lane.b32.xlu0 %v1037_v48, %s2164_s12 }
 0x2c4   : > { %v1050_v13 = vpop.permute.xlu0 %1049  ;;  %v1054_v7 = vpop.permute.xlu1 %1053 }
 0x2c5   : > { %v1052_v6 = vmul.f32 %v1050_v13, %v1037_v48 }
 0x2c7   : > { %v1056_v14 = vmul.f32 %v1054_v7, %v1052_v6 }
 0x2c8   : > { %v1059_v27 = vpop.permute.xlu0 %1058 }
 0x2c9   : > { %v1061_v34 = vadd.f32 %v1059_v27, %v1056_v14 }
 0x2cb   : > { %vm1062_vm8 = vcmp.gt.f32.partialorder %v1061_v34, 0.0  ;;  %v1063_v33 = vmul.f32 0.01, %v1061_v34 }
 0x2cd   : > { %v1064_v30 = vsel %vm1062_vm8, %v1061_v34, %v1063_v33 }
 0x2ce   : > { %v1065_v60 = vpack.c.bf16 %v1064_v30, %v1064_v30  ;;  %v1654_v5 = vrot.slane %v1064_v30, %v2427_v3  ;;  %v2808_v30 = vld [vmem:[%s3161_s8] ss:$0 sm:$0xff] }
 0x2d0   : > { %1078 = vrot.lane.b32.xlu1 %v1065_v60, %s2164_s12  ;;  %v1662_v17 = vrot.slane %v1654_v5, %v2427_v3 }
 0x2d2   : > { %v1670_v4 = vcombine.high %v1662_v17, %v1662_v17 }
 0x342   : > { %v1079_v38 = vpop.permute.xlu1 %1078 }
 0x343   : > { %1976 = vmatmul.mubr.msk.bf16.vlgmr.msra.gmra.mrb[0].mxu1 %vm685_vm1, %v1079_v38 }
 0x344   : > { %2017 = vmatpush3.bf16.msra.mxu1 %v2659_v47  ;;  %1995 = vmatprep.mubr.msk.bf16.mxu1 %vm685_vm1, %v3171_v19  ;;  %v3174_v47 = vpack.c.bf16 %v2513_v1, %v2511_v0  ;;  %v3179_v0 = vpack.c.bf16 %v2589_v41, %v2587_v42  ;;  %v3180_v1 = vpack.c.bf16 %v2641_v39, %v2627_v12  ;;  %v2783_v41 = vsub.s32 0, %v2424_v61 }
 0x345   : > { %2016 = vmatprep.subr.bf16.mxu1 %v2076_v50  ;;  %v1655_v39 = vcombine.high %v1654_v5, %v1654_v5 }
 0x346   : > { %v1675_v63 = vrot.slane %v1662_v17, %v2783_v41  ;;  %v1683_v34 = vrot.slane %v1670_v4, %v2783_v41 }
 0x347   : > { %v1669_v48 = vrot.slane %v1655_v39, %v2427_v3 }
 0x348   : > { %2018 = vmatpush3.bf16.msra.mxu1 %v2076_v50 }
 0x349   : > { %v1679_v20 = vrot.slane %v1669_v48, %v2783_v41  ;;  %v1671_v7 = vcombine.high %v1669_v48, %v1669_v48 }
 0x34b   : > { %1996 = vmatmul.mubr.msk.bf16.vlgmr.msra.gmra.mrb[4].mxu1 %vm685_vm1, %v3172_v18  ;;  %v1687_v33 = vrot.slane %v1671_v7, %v2783_v41  ;;  %v1271_v18 = vadd.f32 %v2699_v11, %v2808_v30  ;;  %v2828_v11 = vadd.f32 %v2711_v58, %v2808_v30  ;;  %v2847_v58 = vadd.f32 %v2808_v30, %v2721_v59 }
 0x34c   : > { %1999 = vmatprep.mubr.msk.bf16.mxu1 %vm685_vm1, %v3173_v10  ;;  %v1263_v10 = vadd.f32 %v2808_v30, %v2701_v24  ;;  %v1282_v24 = vadd.f32 %v2808_v30, %v2713_v28 }
 0x353   : > { %2000 = vmatmul.mubr.msk.bf16.gmra.mrb[8].mxu1 %vm685_vm1, %v3174_v47  ;;  %v2816_v47 = vadd.f32 %v2703_v26, %v2808_v30  ;;  %v2834_v26 = vadd.f32 %v2715_v43, %v2808_v30 }
 0x354   : > { %2003 = vmatprep.mubr.msk.bf16.mxu1 %vm685_vm1, %v3175_v29  ;;  %v1266_v29 = vadd.f32 %v2808_v30, %v2705_v56  ;;  %v2838_v56 = vadd.f32 %v2808_v30, %v2717_v49 }
 0x35b   : > { %2004 = vmatmul.mubr.msk.bf16.gmra.mrb[12].mxu1 %vm685_vm1, %v3176_v35 }
 0x35c   : > { %2007 = vmatprep.mubr.msk.bf16.mxu1 %vm685_vm1, %v3177_v36 }
 0x363   : > { %2008 = vmatmul.mubr.msk.bf16.gmra.mrb[16].mxu1 %vm685_vm1, %v3178_v37  ;;  %v2822_v37 = vadd.f32 %v2707_v44, %v2808_v30  ;;  %v2842_v44 = vadd.f32 %v2719_v23, %v2808_v30 }
 0x364   : > { %2011 = vmatprep.mubr.msk.bf16.mxu1 %vm685_vm1, %v3179_v0  ;;  %v1279_v0 = vadd.f32 %v2808_v30, %v2709_v62 }
 0x36b   : > { %2012 = vmatmul.mubr.msk.bf16.gmra.mrb[20].mxu1 %vm685_vm1, %v3180_v1 }
 0x416   : > { %v1129_v45 = vpop.f32.mrb[0].mxu1 }
 0x417   : > { %v1130_v8 = vadd.f32 %v1894_v40, %v1129_v45  ;;  %v1977_v9 = vpop.f32.mrb[1].mxu1 }
 0x418   : > { %v1132_v32 = vpop.f32.mrb[2].mxu1 }
 0x419   : > { %v1898_v54 = vmul.f32 -1.442695, %v1130_v8  ;;  %v1473_v55 = vrot.slane %v1130_v8, %v2427_v3  ;;  %v1978_v42 = vpop.f32.mrb[3].mxu1 }
 0x41b   : > { %2091 = vpow2.f32 %v1898_v54  ;;  %v1474_v12 = vcombine.high %v1473_v55, %v1473_v55  ;;  %v1481_v46 = vrot.slane %v1473_v55, %v2427_v3 }
 0x41d   : > { %v1494_v51 = vrot.slane %v1481_v46, %v2783_v41  ;;  %v1488_v50 = vrot.slane %v1474_v12, %v2427_v3  ;;  %v1489_v25 = vcombine.high %v1481_v46, %v1481_v46 }
 0x41e   : > { %v1997_v22 = vpop.f32.mrb[4].mxu1 }
 0x41f   : > { %1507 = vrot.lane.b32.xlu0 %v1494_v51, %s2165_s30  ;;  %v1310_v31 = vpop.f32.mrb[5].mxu1  ;;  %v1498_v52 = vrot.slane %v1488_v50, %v2783_v41  ;;  %v1502_v16 = vrot.slane %v1489_v25, %v2783_v41  ;;  %v1490_v57 = vcombine.high %v1488_v50, %v1488_v50  ;;  %v1319_v28 = vadd.f32 %v1997_v22, %v2808_v30 }
 0x420   : > { %v1998_v61 = vpop.f32.mrb[6].mxu1  ;;  %v1311_v1 = vadd.f32 %v2808_v30, %v1310_v31 }
 0x421   : > { %1509 = vrot.lane.b32.xlu1 %v1498_v52, %s2165_s30  ;;  %v1313_v53 = vpop.f32.mrb[7].mxu1  ;;  %v1506_v6 = vrot.slane %v1490_v57, %v2783_v41  ;;  %v1322_v43 = vadd.f32 %v1998_v61, %v2808_v30 }
 0x422   : > { %v1314_v45 = vadd.f32 %v2808_v30, %v1313_v53 }
 0x423   : > { %1511 = vrot.lane.b32.xlu0 %v1502_v16, %s2165_s30 }
 0x425   : > { %v2092_v15 = vpop.eup %2091  ;;  %1690 = vrot.lane.b32.xlu1 %v1679_v20, %s2164_s12 }
 0x426   : > { %v1138_v21 = vadd.f32 1.0, %v2092_v15  ;;  %v2001_v2 = vpop.f32.mrb[8].mxu1 }
 0x427   : > { %1688 = vrot.lane.b32.xlu0 %v1675_v63, %s2164_s12  ;;  %v1326_v13 = vpop.f32.mrb[9].mxu1  ;;  %v1335_v23 = vadd.f32 %v2001_v2, %v2808_v30 }
 0x428   : > { %2093 = vrcp.f32 %v1138_v21  ;;  %v2002_v14 = vpop.f32.mrb[10].mxu1  ;;  %v1327_v5 = vadd.f32 %v2808_v30, %v1326_v13 }
 0x429   : > { %1513 = vrot.lane.b32.xlu1 %v1506_v6, %s2165_s30  ;;  %v1329_v27 = vpop.f32.mrb[11].mxu1  ;;  %v1338_v8 = vadd.f32 %v2002_v14, %v2808_v30  ;;  %s2099_s30 = sshll.u32 %s2166_s29, 4  ;;  %s2100_s30 = int_to_ptr.vmem [resolvable:$false] %s2099_s30 }
 0x42a   : > { %v1330_v59 = vadd.f32 %v2808_v30, %v1329_v27 }
 0x42b   : > { %1692 = vrot.lane.b32.xlu0 %v1683_v34, %s2164_s12 }
 0x42d   : > { %1694 = vrot.lane.b32.xlu1 %v1687_v33, %s2164_s12  ;;  %s386_s12 = sand.u32 1, %s2149_s14  }
 0x42e   : > { %v2005_v60 = vpop.f32.mrb[12].mxu1  ;;  %s1874_s28 = sshll.u32 %s386_s12, 2  ;;  %s3010_s27 = scalar_lea.sflag [#allocation3], %s386_s12 }
 0x42f   : > { %v1342_v38 = vpop.f32.mrb[13].mxu1  ;;  %v1351_v9 = vadd.f32 %v2005_v60, %v2808_v30  ;;  %s2935_s26 = scalar_lea.vmem [#allocation2], %s1874_s28 }
 0x430   : > { %v2006_v19 = vpop.f32.mrb[14].mxu1  ;;  %v1343_v12 = vadd.f32 %v2808_v30, %v1342_v38  ;;  %s1757_s18 = sshll.u32 %s2935_s26, 4  ;;  %s2981_s18 = int_to_ptr.vmem [resolvable:$true] %s1757_s18 }
 0x431   : > { %v1345_v35 = vpop.f32.mrb[15].mxu1  ;;  %v1354_v39 = vadd.f32 %v2006_v19, %v2808_v30  ;;  %s2095_s28 = scalar_lea.vmem %s2981_s18, 64  ;;  %p2102_p0 = scmp.lt.s32.totalorder %s2981_s18, %s2100_s30 }
 0x432   : > { %v2094_v36 = vpop.eup %2093  ;;  %v1346_v51 = vadd.f32 %v2808_v30, %v1345_v35  ;;  %p2096_p11 = scmp.ne.s32.totalorder %s2981_s18, %s2095_s28 }
 0x433   : > { %v1396_v62 = vrot.slane %v2094_v36, %v2427_v3 }
 0x434   : > { %p2097_p12 = pnand %p2096_p11, %p2262_p5 }
 0x435   : > { %v1397_v40 = vcombine.high %v1396_v62, %v1396_v62  ;;  %v1404_v49 = vrot.slane %v1396_v62, %v2427_v3 }
 0x436   : > { %v2009_v32 = vpop.f32.mrb[16].mxu1  ;;  %p2098_p13 = pneg %p2097_p12 }
 0x437   : > { %v1411_v54 = vrot.slane %v1397_v40, %v2427_v3  ;;  %v1412_v55 = vcombine.high %v1404_v49, %v1404_v49  ;;  %v1417_v42 = vrot.slane %v1404_v49, %v2783_v41  ;;  %v1358_v46 = vpop.f32.mrb[17].mxu1  ;;  %v1367_v50 = vadd.f32 %v2009_v32, %v2808_v30 }
 0x438   : > { %v1359_v25 = vadd.f32 %v2808_v30, %v1358_v46  ;;  %v2010_v22 = vpop.f32.mrb[18].mxu1 }
 0x439   : > { %v1413_v31 = vcombine.high %v1411_v54, %v1411_v54  ;;  %v1421_v52 = vrot.slane %v1411_v54, %v2783_v41  ;;  %v1425_v3 = vrot.slane %v1412_v55, %v2783_v41  ;;  %v1370_v48 = vadd.f32 %v2010_v22, %v2808_v30  ;;  %v1361_v61 = vpop.f32.mrb[19].mxu1 }
 0x43a   : > { %v1362_v53 = vadd.f32 %v2808_v30, %v1361_v61  ;;  %v1434_v16 = vmul.f32 %v1417_v42, %v1263_v10  ;;  %v1435_v17 = vmul.f32 %v1417_v42, %v1266_v29  ;;  %v1436_v20 = vmul.f32 %v1417_v42, %v1271_v18 }
 0x43b   : > { %v1429_v57 = vrot.slane %v1413_v31, %v2783_v41  ;;  %v2871_v15 = vmul.f32 %v1421_v52, %v1319_v28  ;;  %v2873_v63 = vmul.f32 %v1421_v52, %v1311_v1  ;;  %v2875_v4 = vmul.f32 %v1421_v52, %v1322_v43 }
 0x43c   : > { %v2877_v21 = vmul.f32 %v1421_v52, %v1314_v45  ;;  %v2879_v2 = vmul.f32 %v1425_v3, %v1335_v23  ;;  %v2881_v13 = vmul.f32 %v1425_v3, %v1327_v5  ;;  %v2883_v6 = vmul.f32 %v1425_v3, %v1338_v8 }
 0x43d   : > { %v2885_v7 = vmul.f32 %v1425_v3, %v1330_v59  ;;  %v2887_v14 = vmul.f32 %v1425_v3, %v1351_v9  ;;  %v2889_v27 = vmul.f32 %v1425_v3, %v1343_v12  ;;  %v2891_v41 = vmul.f32 %v1425_v3, %v1354_v39 }
 0x43e   : > { %v2893_v34 = vmul.f32 %v1425_v3, %v1346_v51  ;;  %v2895_v33 = vmul.f32 %v1429_v57, %v1367_v50  ;;  %v2897_v60 = vmul.f32 %v1429_v57, %v1359_v25  ;;  %v2899_v38 = vmul.f32 %v1429_v57, %v1370_v48  ;;  %v2013_v19 = vpop.f32.mrb[20].mxu1 }
 0x43f   : > { %v2901_v18 = vmul.f32 %v1429_v57, %v1362_v53  ;;  %v1383_v10 = vadd.f32 %v2013_v19, %v2808_v30  ;;  %v1374_v29 = vpop.f32.mrb[21].mxu1  ;;  %v1437_v35 = vmul.f32 %v1417_v42, %v2816_v47  ;;  %v1438_v36 = vmul.f32 %v1417_v42, %v1279_v0 }
 0x440   : > { %v1375_v62 = vadd.f32 %v2808_v30, %v1374_v29  ;;  %v2014_v28 = vpop.f32.mrb[22].mxu1  ;;  %v1439_v1 = vmul.f32 %v1417_v42, %v1282_v24  ;;  %v1440_v43 = vmul.f32 %v1417_v42, %v2822_v37  ;;  %v1441_v40 = vmul.f32 %v1417_v42, %v2828_v11 }
 0x441   : > { %v2908_v49 = vmul.f32 %v1429_v57, %v1383_v10  ;;  %v1386_v45 = vadd.f32 %v2014_v28, %v2808_v30  ;;  %v1377_v23 = vpop.f32.mrb[23].mxu1  ;;  %v1442_v5 = vmul.f32 %v1421_v52, %v2838_v56  ;;  %v1443_v47 = vmul.f32 %v1421_v52, %v2847_v58 }
 0x442   : > { %v2913_v0 = vmul.f32 %v1429_v57, %v1375_v62  ;;  %v1378_v8 = vadd.f32 %v2808_v30, %v1377_v23  ;;  %v1444_v24 = vmul.f32 %v1421_v52, %v2834_v26  ;;  %v1445_v37 = vmul.f32 %v1421_v52, %v2842_v44 }
 0x443   : > { %v2918_v59 = vmul.f32 %v1429_v57, %v1386_v45 }
 0x444   : > { %v2920_v11 = vmul.f32 %v1429_v57, %v1378_v8 }
 0x491   : > { %v1508_v9 = vpop.permute.xlu0 %1507 }
 0x492   : > { %v1519_v32 = vadd.f32 %v1508_v9, %v1434_v16  ;;  %v1520_v54 = vadd.f32 %v1508_v9, %v1435_v17  ;;  %v1521_v56 = vadd.f32 %v1508_v9, %v1436_v20  ;;  %v1522_v55 = vadd.f32 %v1508_v9, %v1437_v35 }
 0x493   : > { %v1523_v58 = vadd.f32 %v1508_v9, %v1438_v36  ;;  %v1524_v30 = vadd.f32 %v1508_v9, %v1439_v1  ;;  %v1525_v42 = vadd.f32 %v1508_v9, %v1440_v43  ;;  %v1526_v26 = vadd.f32 %v1508_v9, %v1441_v40  ;;  %v1510_v12 = vpop.permute.xlu1 %1509 }
 0x494   : > { %vm1551_vm10 = vcmp.gt.f32.partialorder %v1519_v32, 0.0  ;;  %vm1552_vm11 = vcmp.gt.f32.partialorder %v1520_v54, 0.0  ;;  %vm1553_vm12 = vcmp.gt.f32.partialorder %v1521_v56, 0.0  ;;  %vm1554_vm13 = vcmp.gt.f32.partialorder %v1522_v55, 0.0 }
 0x495   : > { %vm1555_vm14 = vcmp.gt.f32.partialorder %v1523_v58, 0.0  ;;  %vm1556_vm15 = vcmp.gt.f32.partialorder %v1524_v30, 0.0  ;;  %vm1557_vm0 = vcmp.gt.f32.partialorder %v1525_v42, 0.0  ;;  %vm1558_vm2 = vcmp.gt.f32.partialorder %v1526_v26, 0.0  ;;  %v2925_v44 = vpop.permute.xlu0 %1511 }
 0x496   : > { %v1583_v46 = vmul.f32 0.01, %v1519_v32  ;;  %v1584_v39 = vmul.f32 0.01, %v1520_v54  ;;  %v1585_v51 = vmul.f32 0.01, %v1521_v56  ;;  %v1527_v50 = vadd.f32 %v1510_v12, %v1442_v5 }
 0x497   : > { %v1586_v25 = vmul.f32 0.01, %v1522_v55  ;;  %v1587_v22 = vmul.f32 0.01, %v1523_v58  ;;  %v1588_v31 = vmul.f32 0.01, %v1524_v30  ;;  %v1528_v52 = vadd.f32 %v1510_v12, %v1443_v47  ;;  %v1691_v3 = vpop.permute.xlu1 %1690 }
 0x498   : > { %v1589_v48 = vmul.f32 0.01, %v1525_v42  ;;  %v1590_v61 = vmul.f32 0.01, %v1526_v26  ;;  %v1615_v53 = vsel %vm1551_vm10, %v1519_v32, %v1583_v46  ;;  %v1616_v16 = vsel %vm1552_vm11, %v1520_v54, %v1584_v39  ;;  %1702 = vst.msk [vmem:[%s2935_s26 + $0x1] sm:$0x1] %vm1700_vm9, %v1691_v3 }
 0x499   : > { %v1617_v17 = vsel %vm1553_vm12, %v1521_v56, %v1585_v51  ;;  %v1618_v20 = vsel %vm1554_vm13, %v1522_v55, %v1586_v25  ;;  %v1619_v57 = vsel %vm1555_vm14, %v1523_v58, %v1587_v22  ;;  %v1620_v19 = vsel %vm1556_vm15, %v1524_v30, %v1588_v31  ;;  %1705 = vst.msk [vmem:[%s2931_s11] sm:$0xff] %vm685_vm1, %v1615_v53  ;;  %v1689_v10 = vpop.permute.xlu0 %1688 }
 0x49a   : > { %1706 = vst.msk [vmem:[%s2931_s11 + $0x8] sm:$0xff] %vm685_vm1, %v1616_v16  ;;  %v1621_v29 = vsel %vm1557_vm0, %v1525_v42, %v1589_v48  ;;  %v1622_v35 = vsel %vm1558_vm2, %v1526_v26, %v1590_v61  ;;  %1707 = vst.msk [vmem:[%s2931_s11 + $0x10] sm:$0xff] %vm685_vm1, %v1617_v17  ;;  %v1529_v36 = vadd.f32 %v1510_v12, %v1444_v24  ;;  %vm1559_vm3 = vcmp.gt.f32.partialorder %v1527_v50, 0.0 }
 0x49b   : > { %1708 = vst.msk [vmem:[%s2931_s11 + $0x18] sm:$0xff] %vm685_vm1, %v1618_v20  ;;  %1709 = vst.msk [vmem:[%s2931_s11 + $0x20] sm:$0xff] %vm685_vm1, %v1619_v57  ;;  %v1530_v62 = vadd.f32 %v1510_v12, %v1445_v37  ;;  %v1531_v28 = vadd.f32 %v1510_v12, %v2873_v63  ;;  %v1532_v1 = vadd.f32 %v1510_v12, %v2877_v21  ;;  %v2972_v45 = vpop.permute.xlu1 %1513  ;;  %vm1560_vm4 = vcmp.gt.f32.partialorder %v1528_v52, 0.0 }
 0x49c   : > { %1710 = vst.msk [vmem:[%s2931_s11 + $0x28] sm:$0xff] %vm685_vm1, %v1620_v19  ;;  %1711 = vst.msk [vmem:[%s2931_s11 + $0x30] sm:$0xff] %vm685_vm1, %v1621_v29  ;;  %v2966_v43 = vadd.f32 %v1510_v12, %v2871_v15  ;;  %v2969_v40 = vadd.f32 %v1510_v12, %v2875_v4  ;;  %vm1561_vm5 = vcmp.gt.f32.partialorder %v1529_v36, 0.0  ;;  %v1591_v63 = vmul.f32 0.01, %v1527_v50 }
 0x49d   : > { %1701 = vst.msk [vmem:[%s2935_s26] sm:$0x1] %vm1700_vm9, %v1689_v10  ;;  %vm1562_vm6 = vcmp.gt.f32.partialorder %v1530_v62, 0.0  ;;  %vm1563_vm7 = vcmp.gt.f32.partialorder %v1531_v28, 0.0  ;;  %vm1564_vm8 = vcmp.gt.f32.partialorder %v1532_v1, 0.0  ;;  %v1693_v15 = vpop.permute.xlu0 %1692  ;;  %v2979_v23 = vadd.f32 %v2925_v44, %v2881_v13 }
 0x49e   : > { %1712 = vst.msk [vmem:[%s2931_s11 + $0x38] sm:$0xff] %vm685_vm1, %v1622_v35  ;;  %vm1565_vm10 = vcmp.gt.f32.partialorder %v2966_v43, 0.0  ;;  %vm1566_vm11 = vcmp.gt.f32.partialorder %v2969_v40, 0.0  ;;  %v1592_v4 = vmul.f32 0.01, %v1528_v52  ;;  %v2992_v13 = vadd.f32 %v2925_v44, %v2885_v7 }
 0x49f   : > { %v1593_v21 = vmul.f32 0.01, %v1529_v36  ;;  %1703 = vst.msk [vmem:[%s2935_s26 + $0x2] sm:$0x1] %vm1700_vm9, %v1693_v15  ;;  %v1594_v5 = vmul.f32 0.01, %v1530_v62  ;;  %v1695_v24 = vpop.permute.xlu1 %1694  ;;  %v1623_v32 = vsel %vm1559_vm3, %v1527_v50, %v1591_v63 }
 0x4a0   : > { %v1595_v47 = vmul.f32 0.01, %v1531_v28  ;;  %v1596_v8 = vmul.f32 0.01, %v1532_v1  ;;  %v1597_v37 = vmul.f32 0.01, %v2966_v43  ;;  %v1624_v54 = vsel %vm1560_vm4, %v1528_v52, %v1592_v4 }
 0x4a1   : > { %v1598_v9 = vmul.f32 0.01, %v2969_v40  ;;  %1704 = vst.msk [vmem:[%s2935_s26 + $0x3] sm:$0x1] %vm1700_vm9, %v1695_v24  ;;  %v1625_v56 = vsel %vm1561_vm5, %v1529_v36, %v1593_v21  ;;  %v1626_v55 = vsel %vm1562_vm6, %v1530_v62, %v1594_v5  ;;  %s2101_s26 = scalar_lea.vmem %s2100_s30, 128 }
 0x4a2   : > { %v1627_v7 = vsel %vm1563_vm7, %v1531_v28, %v1595_v47  ;;  %v1628_v58 = vsel %vm1564_vm8, %v1532_v1, %v1596_v8  ;;  %1713 = vst.msk [vmem:[%s2931_s11 + $0x40] sm:$0xff] %vm685_vm1, %v1623_v32  ;;  %1714 = vst.msk [vmem:[%s2931_s11 + $0x48] sm:$0xff] %vm685_vm1, %v1624_v54  ;;  %p2103_p1 = scmp.lt.s32.totalorder %s2101_s26, %s2095_s28 }
 0x4a4   : > { %p2104_p2 = por %p2103_p1, %p2102_p0 }
 0x4a6   : > { %p2105_p3 = pnand %p2104_p2, %p2098_p13 }
 0x4a8   : > { %2108 = shalt.err (!%p2105_p3)
}
 0x4a9   : > { %s2109_s12 = scalar_lea.hbm %s2988_s25, 64  ;;  %s2113_s20 = scalar_lea.hbm %s3162_s9, 128 }
 0x4aa   : > { %p2110_p4 = scmp.ne.s32.totalorder %s2988_s25, %s2109_s12  ;;  %p2114_p9 = scmp.lt.u32.totalorder %s2988_s25, %s3162_s9 }
 0x4ab   : > { %p2115_p10 = scmp.lt.u32.totalorder %s2113_s20, %s2109_s12  ;;  %p2117_p12 = scmp.lt.u32.totalorder %s2109_s12, %s2988_s25 }
 0x4ac   : > { %p2111_p7 = pnand %p2110_p4, %p2262_p5 }
 0x4ad   : > { %p2116_p11 = por %p2115_p10, %p2114_p9 }
 0x4ae   : > { %p2112_p8 = pneg %p2111_p7 }
 0x4af   : > { %p2118_p13 = por %p2117_p12, %p2116_p11 }
 0x4b1   : > { %p2119_p0 = pnand %p2118_p13, %p2112_p8 }
 0x4b3   : > { %2122 = shalt.err (!%p2119_p0)
}
 0x4b4   : > { %s2167_s28 = smov 16   ;;  %s2168_s26 = smov 1   ;;  %v1629_v30 = vsel %vm1565_vm10, %v2966_v43, %v1597_v37  ;;  %v1630_v42 = vsel %vm1566_vm11, %v2969_v40, %v1598_v9  ;;  %1715 = vst.msk [vmem:[%s2931_s11 + $0x50] sm:$0xff] %vm685_vm1, %v1625_v56  ;;  %1716 = vst.msk [vmem:[%s2931_s11 + $0x58] sm:$0xff] %vm685_vm1, %v1626_v55  ;;  %v1537_v26 = vadd.f32 %v2925_v44, %v2879_v2  ;;  %vm1567_vm9 = vcmp.gt.f32.partialorder %v2979_v23, 0.0 }
 0x4b5   : > { %2019 = dma.vmem_to_hbm [thread:$0]  (%p2262_p5), %s2981_s18, 64, %s2988_s25, %s3010_s27, %s2167_s28, %s2167_s28, %s2168_s26   ;;  %v1538_v12 = vadd.f32 %v2925_v44, %v2883_v6  ;;  %v1539_v46 = vadd.f32 %v2925_v44, %v2889_v27  ;;  %v1540_v39 = vadd.f32 %v2925_v44, %v2893_v34  ;;  %v1541_v51 = vadd.f32 %v2925_v44, %v2887_v14 }
 0x4b6   : > { %1717 = vst.msk [vmem:[%s2931_s11 + $0x60] sm:$0xff] %vm685_vm1, %v1627_v7  ;;  %1718 = vst.msk [vmem:[%s2931_s11 + $0x68] sm:$0xff] %vm685_vm1, %v1628_v58  ;;  %v1542_v50 = vadd.f32 %v2925_v44, %v2891_v41  ;;  %vm1568_vm12 = vcmp.gt.f32.partialorder %v2992_v13, 0.0  ;;  %vm1569_vm13 = vcmp.gt.f32.partialorder %v1537_v26, 0.0  ;;  %v1599_v2 = vmul.f32 0.01, %v2979_v23 }
 0x4b7   : > { %1719 = vst.msk [vmem:[%s2931_s11 + $0x70] sm:$0xff] %vm685_vm1, %v1629_v30  ;;  %1720 = vst.msk [vmem:[%s2931_s11 + $0x78] sm:$0xff] %vm685_vm1, %v1630_v42  ;;  %vm1570_vm14 = vcmp.gt.f32.partialorder %v1538_v12, 0.0  ;;  %vm1571_vm15 = vcmp.gt.f32.partialorder %v1539_v46, 0.0  ;;  %vm1572_vm0 = vcmp.gt.f32.partialorder %v1540_v39, 0.0  ;;  %vm1573_vm2 = vcmp.gt.f32.partialorder %v1541_v51, 0.0 }
 0x4b8   : > { %vm1574_vm3 = vcmp.gt.f32.partialorder %v1542_v50, 0.0  ;;  %v1600_v6 = vmul.f32 0.01, %v2992_v13  ;;  %v1601_v14 = vmul.f32 0.01, %v1537_v26  ;;  %v1543_v27 = vadd.f32 %v2972_v45, %v2897_v60 }
 0x4b9   : > { %v1602_v41 = vmul.f32 0.01, %v1538_v12  ;;  %v1603_v34 = vmul.f32 0.01, %v1539_v46  ;;  %v1604_v44 = vmul.f32 0.01, %v1540_v39  ;;  %v1544_v25 = vadd.f32 %v2972_v45, %v2901_v18 }
 0x4ba   : > { %v1605_v22 = vmul.f32 0.01, %v1541_v51  ;;  %v1606_v31 = vmul.f32 0.01, %v1542_v50  ;;  %v1631_v52 = vsel %vm1567_vm9, %v2979_v23, %v1599_v2  ;;  %v1632_v60 = vsel %vm1568_vm12, %v2992_v13, %v1600_v6 }
 0x4bb   : > { %v1633_v3 = vsel %vm1569_vm13, %v1537_v26, %v1601_v14  ;;  %v1634_v48 = vsel %vm1570_vm14, %v1538_v12, %v1602_v41  ;;  %v1635_v61 = vsel %vm1571_vm15, %v1539_v46, %v1603_v34  ;;  %v1636_v18 = vsel %vm1572_vm0, %v1540_v39, %v1604_v44  ;;  %1721 = vst.msk [vmem:[%s2931_s11 + $0x80] sm:$0xff] %vm685_vm1, %v1631_v52 }
 0x4bc   : > { %1722 = vst.msk [vmem:[%s2931_s11 + $0x88] sm:$0xff] %vm685_vm1, %v1632_v60  ;;  %v1637_v53 = vsel %vm1573_vm2, %v1541_v51, %v1605_v22  ;;  %v1638_v16 = vsel %vm1574_vm3, %v1542_v50, %v1606_v31  ;;  %1723 = vst.msk [vmem:[%s2931_s11 + $0x90] sm:$0xff] %vm685_vm1, %v1633_v3  ;;  %v1545_v17 = vadd.f32 %v2972_v45, %v2895_v33  ;;  %vm1575_vm4 = vcmp.gt.f32.partialorder %v1543_v27, 0.0 }
 0x4bd   : > { %1724 = vst.msk [vmem:[%s2931_s11 + $0x98] sm:$0xff] %vm685_vm1, %v1634_v48  ;;  %1725 = vst.msk [vmem:[%s2931_s11 + $0xa0] sm:$0xff] %vm685_vm1, %v1635_v61  ;;  %v1546_v20 = vadd.f32 %v2972_v45, %v2899_v38  ;;  %v1547_v57 = vadd.f32 %v2972_v45, %v2913_v0  ;;  %v1548_v19 = vadd.f32 %v2972_v45, %v2920_v11  ;;  %vm1576_vm5 = vcmp.gt.f32.partialorder %v1544_v25, 0.0 }
 0x4be   : > { %1726 = vst.msk [vmem:[%s2931_s11 + $0xa8] sm:$0xff] %vm685_vm1, %v1636_v18  ;;  %1727 = vst.msk [vmem:[%s2931_s11 + $0xb0] sm:$0xff] %vm685_vm1, %v1637_v53  ;;  %v1549_v10 = vadd.f32 %v2972_v45, %v2908_v49  ;;  %v1550_v29 = vadd.f32 %v2972_v45, %v2918_v59  ;;  %vm1577_vm6 = vcmp.gt.f32.partialorder %v1545_v17, 0.0  ;;  %v1607_v33 = vmul.f32 0.01, %v1543_v27 }
 0x4bf   : > { %1728 = vst.msk [vmem:[%s2931_s11 + $0xb8] sm:$0xff] %vm685_vm1, %v1638_v16  ;;  %vm1578_vm7 = vcmp.gt.f32.partialorder %v1546_v20, 0.0  ;;  %vm1579_vm8 = vcmp.gt.f32.partialorder %v1547_v57, 0.0  ;;  %vm1580_vm10 = vcmp.gt.f32.partialorder %v1548_v19, 0.0  ;;  %v1608_v38 = vmul.f32 0.01, %v1544_v25 }
 0x4c0   : > { %vm1581_vm11 = vcmp.gt.f32.partialorder %v1549_v10, 0.0  ;;  %vm1582_vm9 = vcmp.gt.f32.partialorder %v1550_v29, 0.0  ;;  %v1609_v0 = vmul.f32 0.01, %v1545_v17  ;;  %v1610_v11 = vmul.f32 0.01, %v1546_v20 }
 0x4c1   : > { %v1611_v49 = vmul.f32 0.01, %v1547_v57  ;;  %v1612_v35 = vmul.f32 0.01, %v1548_v19  ;;  %v1613_v59 = vmul.f32 0.01, %v1549_v10  ;;  %v1639_v62 = vsel %vm1575_vm4, %v1543_v27, %v1607_v33 }
 0x4c2   : > { %v1614_v36 = vmul.f32 0.01, %v1550_v29  ;;  %v1640_v28 = vsel %vm1576_vm5, %v1544_v25, %v1608_v38  ;;  %v1641_v1 = vsel %vm1577_vm6, %v1545_v17, %v1609_v0  ;;  %v1642_v43 = vsel %vm1578_vm7, %v1546_v20, %v1610_v11  ;;  %1729 = vst.msk [vmem:[%s2931_s11 + $0xc0] sm:$0xff] %vm685_vm1, %v1639_v62 }
 0x4c3   : > { %v1643_v40 = vsel %vm1579_vm8, %v1547_v57, %v1611_v49  ;;  %v1644_v45 = vsel %vm1580_vm10, %v1548_v19, %v1612_v35  ;;  %1730 = vst.msk [vmem:[%s2931_s11 + $0xc8] sm:$0xff] %vm685_vm1, %v1640_v28  ;;  %v1645_v15 = vsel %vm1581_vm11, %v1549_v10, %v1613_v59  ;;  %1731 = vst.msk [vmem:[%s2931_s11 + $0xd0] sm:$0xff] %vm685_vm1, %v1641_v1 }
 0x4c4   : > { %v1646_v63 = vsel %vm1582_vm9, %v1550_v29, %v1614_v36  ;;  %1732 = vst.msk [vmem:[%s2931_s11 + $0xd8] sm:$0xff] %vm685_vm1, %v1642_v43  ;;  %1733 = vst.msk [vmem:[%s2931_s11 + $0xe0] sm:$0xff] %vm685_vm1, %v1643_v40 }
 0x4c5   : > { %1734 = vst.msk [vmem:[%s2931_s11 + $0xe8] sm:$0xff] %vm685_vm1, %v1644_v45  ;;  %1735 = vst.msk [vmem:[%s2931_s11 + $0xf0] sm:$0xff] %vm685_vm1, %v1645_v15 }
 0x4c6   : > { %1736 = vst.msk [vmem:[%s2931_s11 + $0xf8] sm:$0xff] %vm685_vm1, %v1646_v63 }
 0x4c7 PF: > { %p2025_p5 = scmp.ge.s32.totalorder %s2157_s16, 2  ;;  %s1776_s23 = sand.u32 1, %s2145_s13  }
 0x4c8   : > { %s1777_s18 = scalar_lea.sflag [#allocation3], %s1776_s23 }
 0x4c9   : > { %p2022_p1 = pnand %p2025_p5, %p2266_p6 }
 0x4cb   : > { %2140 = dma.done.wait (!%p2022_p1), %s1777_s18, 64  }
 0x4cc   : > { %2142 = vsyncadd (!%p2022_p1), %s1777_s18, 4294967232  ;;  %p21_p2 = scmp.ge.s32.totalorder %s2249_s19, 4   ;;  %s3181_s13 = smov %s2149_s14 }
 0x4cd   : > { %s3182_s14 = smov %s2153_s15  ;;  %s3183_s15 = smov %s2260_s22 }
 0x4ce   : > { %s3184_s16 = smov %s2249_s19  ;;  %23 = sbr.rel (!%p21_p2) target bundleno = 3 (0x3), region = 109 }
 0x4d5   :  { %1791 = vsyncpa [#allocation3], 1 }
 0x4d6   :  { %1793 = vsyncpa [#allocation3 + $0x1], 1 }

</bundles_post_ra>
